<compile_context>
chip_gen: v7x
topology: tpu7x:2x2x1
jax: 0.10.0
libtpu: 0.0.40
codegen_flags: <defaults>
</compile_context>

<pallas_src>
import functools

import jax
import jax.numpy as jnp
from jax.experimental import pallas as pl
from jax.experimental.pallas import tpu as pltpu

C = 96  # fixed by the module: Conv2d(96, 96, 1)


def _fused_subnet_kernel(x_ref, w1_ref, b1_ref, w2_ref, b2_ref, pool_ref,
                         o_ref, *, nb, q):
    """relu(W2' @ relu(W1 @ x + b1) + b2') @ Mask for a block of `nb` images.

    x_ref:    (nb, C, P)  image pixels, channels on sublanes, pixels on lanes
    w1_ref:   (C, C)      bf16, (Cout, Cin)
    b1_ref:   (C, 1)      f32
    w2_ref:   (C, C)      bf16, already scaled by 1/9 (pool average folded in)
    b2_ref:   (C, 1)      f32, already scaled by 1/9
    pool_ref: (P, Q)      bf16 0/1 window-membership mask
    o_ref:    (1, C, nb*Q) pooled outputs, image i in columns [i*Q, (i+1)*Q)
    """
    w1 = w1_ref[...]
    b1 = b1_ref[...]
    w2 = w2_ref[...]
    b2 = b2_ref[...]
    pool = pool_ref[...]

    # Short static loop over the images in this block: keeps one image's
    # activations live at a time (vreg pressure) while sharing the weight
    # tiles already resident in VMEM.
    for i in range(nb):
        x = x_ref[i].astype(jnp.bfloat16)                    # (C, P)

        h = jnp.dot(w1, x, preferred_element_type=jnp.float32) + b1
        h = jnp.maximum(h, 0.0)                              # ReLU in f32

        y = jnp.dot(w2, h.astype(jnp.bfloat16),
                    preferred_element_type=jnp.float32) + b2
        y = jnp.maximum(y, 0.0)                              # (C, P) f32

        # AvgPool2d(3, 2, 1): 0/1 bf16 mask matmul (1/9 already in W2/b2).
        pooled = jnp.dot(y.astype(jnp.bfloat16), pool,
                         preferred_element_type=jnp.float32)  # (C, Q)
        o_ref[0, :, i * q:(i + 1) * q] = pooled.astype(o_ref.dtype)


def _pool_mask(H, W):
    """(H*W, Hout*Wout) bf16 mask M with M[p, q] = 1 iff pixel p lies in the
    3x3 (stride 2, pad 1) window of output q.  The 1/9 (count_include_pad=True)
    is folded into W2/b2 by the wrapper."""
    Hout = (H + 1) // 2
    Wout = (W + 1) // 2
    h_in = jnp.arange(H)[:, None]
    h_out = jnp.arange(Hout)[None, :]
    ph = (jnp.abs(h_in - 2 * h_out) <= 1).astype(jnp.float32)   # (H, Hout)
    w_in = jnp.arange(W)[:, None]
    w_out = jnp.arange(Wout)[None, :]
    pw = (jnp.abs(w_in - 2 * w_out) <= 1).astype(jnp.float32)   # (W, Wout)
    return jnp.kron(ph, pw).astype(jnp.bfloat16)                # (H*W, Hout*Wout)


def _pick_image_block(N):
    """Images per grid step: amortize per-step overhead while keeping the
    grid length >= 2 (v7x has 2 TensorCores)."""
    for B in (8, 4, 2, 1):
        if N % B == 0 and N // B >= 2:
            return B
    for B in (8, 4, 2, 1):
        if N % B == 0:
            return B
    return 1


@jax.jit
def subnet_forward(x_nchw, w1, b1, w2, b2):
    """x_nchw: (N, 96, H, W) f32 or bf16.  w: (Cout, Cin) f32 (PyTorch conv
    weight squeezed), b: (Cout,) f32.  Returns (N, 96, Hout, Wout) f32 (NCHW)."""
    N, Cin, H, W = x_nchw.shape
    assert Cin == C
    P = H * W
    Hout = (H + 1) // 2
    Wout = (W + 1) // 2
    Q = Hout * Wout
    B = _pick_image_block(N)
    G = N // B

    x_flat = x_nchw.reshape(N, C, P)        # free reshape, stays NCHW-ordered
    pool_msk = _pool_mask(H, W)             # (P, Q) bf16 0/1

    inv9 = jnp.float32(1.0 / 9.0)
    w1b = w1.astype(jnp.bfloat16)
    # Fold the avg-pool 1/9 into the second conv IN F32, then cast once.
    w2b = (w2 * inv9).astype(jnp.bfloat16)
    b1c = b1.reshape(C, 1).astype(jnp.float32)
    b2c = (b2 * inv9).reshape(C, 1).astype(jnp.float32)

    kernel = functools.partial(_fused_subnet_kernel, nb=B, q=Q)

    # Per-step VMEM at (B=4, H=W=16): x 393 KiB (x2 buffers) + weights/mask/out
    # ~< 1.3 MiB total -- far below any scoped limit.
    out_flat = pl.pallas_call(
        kernel,
        out_shape=jax.ShapeDtypeStruct((G, C, B * Q), jnp.float32),
        grid=(G,),
        in_specs=[
            pl.BlockSpec((B, C, P), lambda g: (g, 0, 0)),   # image pixels
            pl.BlockSpec((C, C), lambda g: (0, 0)),         # W1 (bf16)
            pl.BlockSpec((C, 1), lambda g: (0, 0)),         # b1
            pl.BlockSpec((C, C), lambda g: (0, 0)),         # W2/9 (bf16)
            pl.BlockSpec((C, 1), lambda g: (0, 0)),         # b2/9
            pl.BlockSpec((P, Q), lambda g: (0, 0)),         # pool mask (bf16)
        ],
        out_specs=pl.BlockSpec((1, C, B * Q), lambda g: (g, 0, 0)),
        compiler_params=pltpu.CompilerParams(
            dimension_semantics=("parallel",),
        ),
    )(x_flat, w1b, b1c, w2b, b2c, pool_msk)

    # Undo the lane-dense (C, B*Q) per-step layout on the (small) output.
    out = out_flat.reshape(G, C, B, Q).transpose(0, 2, 1, 3)
    out = out.reshape(N, C, Hout, Wout)

    # Dropout(0.5, inplace=True): identity in inference mode.
    # TODO(synk): training-mode dropout (random mask + 1/(1-p) scaling) not implemented.
    return out


def _reference(x_nchw, w1, b1, w2, b2):
    """Pure-JAX f32 reference for the correctness check."""
    def conv1x1(x, w, b):
        return jnp.einsum('oi,nihw->nohw', w, x) + b[None, :, None, None]

    h = jnp.maximum(conv1x1(x_nchw, w1, b1), 0.0)
    y = jnp.maximum(conv1x1(h, w2, b2), 0.0)
    s = jax.lax.reduce_window(
        y, 0.0, jax.lax.add,
        window_dimensions=(1, 1, 3, 3),
        window_strides=(1, 1, 2, 2),
        padding=((0, 0), (0, 0), (1, 1), (1, 1)),
    )
    return s / 9.0


if __name__ == "__main__":
    key = jax.random.PRNGKey(0)
    k1, k2, k3, k4, kx = jax.random.split(key, 5)

    # PyTorch Conv2d(96,96,1) weight is (Cout, Cin, 1, 1); stored here squeezed
    # as (Cout, Cin); bias as (Cout,).
    scale = 1.0 / (C ** 0.5)
    w1 = jax.random.uniform(k1, (C, C), jnp.float32, -scale, scale)
    b1 = jax.random.uniform(k2, (C,), jnp.float32, -scale, scale)
    w2 = jax.random.uniform(k3, (C, C), jnp.float32, -scale, scale)
    b2 = jax.random.uniform(k4, (C,), jnp.float32, -scale, scale)

    # Small input consistent with the module's fixed 96 input channels.
    # N=8 exercises the per-step image batching (B=4 -> grid of 2).
    x = jax.random.normal(kx, (8, C, 16, 16), jnp.float32)

    out = jax.block_until_ready(subnet_forward(x, w1, b1, w2, b2))
    assert out.shape == (8, C, 8, 8), out.shape

    ref = jax.block_until_ready(_reference(x, w1, b1, w2, b2))
    # bf16 matmul operands (f32 accumulation) -> tolerance relaxed accordingly.
    max_err = float(jnp.max(jnp.abs(out - ref)))
    assert jnp.allclose(out, ref, atol=3e-2, rtol=3e-2), max_err

    print("KERNEL_OK")
</pallas_src>

<mosaic_0001>
module attributes {stable_mosaic.version = 11 : i64} {
  func.func @_fused_subnet_kernel(%arg0: i32, %arg1: memref<4x96x256xf32, #tpu.memory_space<vmem>>, %arg2: memref<96x96xbf16, #tpu.memory_space<vmem>>, %arg3: memref<96x1xf32, #tpu.memory_space<vmem>>, %arg4: memref<96x96xbf16, #tpu.memory_space<vmem>>, %arg5: memref<96x1xf32, #tpu.memory_space<vmem>>, %arg6: memref<256x64xbf16, #tpu.memory_space<vmem>>, %arg7: memref<1x96x256xf32, #tpu.memory_space<vmem>>) attributes {dimension_semantics = [#tpu.dimension_semantics<parallel>], iteration_bounds = array<i64: 2>, scalar_prefetch = 0 : i64, scratch_operands = 0 : i64, tpu.core_type = #tpu.core_type<tc>, window_params = [{transform_indices = @transform_0, window_bounds = array<i64: 4, 96, 256>}, {pipeline_mode = #tpu.pipeline_mode<synchronous>, transform_indices = @transform_1, window_bounds = array<i64: 96, 96>}, {pipeline_mode = #tpu.pipeline_mode<synchronous>, transform_indices = @transform_2, window_bounds = array<i64: 96, 1>}, {pipeline_mode = #tpu.pipeline_mode<synchronous>, transform_indices = @transform_3, window_bounds = array<i64: 96, 96>}, {pipeline_mode = #tpu.pipeline_mode<synchronous>, transform_indices = @transform_4, window_bounds = array<i64: 96, 1>}, {pipeline_mode = #tpu.pipeline_mode<synchronous>, transform_indices = @transform_5, window_bounds = array<i64: 256, 64>}, {transform_indices = @transform_6, window_bounds = array<i64: 1, 96, 256>}]} {
    %c0 = arith.constant 0 : index
    %c0_0 = arith.constant 0 : index
    %0 = vector.load %arg2[%c0, %c0_0] : memref<96x96xbf16, #tpu.memory_space<vmem>>, vector<96x96xbf16>
    %c0_1 = arith.constant 0 : index
    %c0_2 = arith.constant 0 : index
    %1 = vector.load %arg3[%c0_1, %c0_2] : memref<96x1xf32, #tpu.memory_space<vmem>>, vector<96x1xf32>
    %c0_3 = arith.constant 0 : index
    %c0_4 = arith.constant 0 : index
    %2 = vector.load %arg4[%c0_3, %c0_4] : memref<96x96xbf16, #tpu.memory_space<vmem>>, vector<96x96xbf16>
    %c0_5 = arith.constant 0 : index
    %c0_6 = arith.constant 0 : index
    %3 = vector.load %arg5[%c0_5, %c0_6] : memref<96x1xf32, #tpu.memory_space<vmem>>, vector<96x1xf32>
    %c0_7 = arith.constant 0 : index
    %c0_8 = arith.constant 0 : index
    %4 = vector.load %arg6[%c0_7, %c0_8] : memref<256x64xbf16, #tpu.memory_space<vmem>>, vector<256x64xbf16>
    %c0_9 = arith.constant 0 : index
    %c0_10 = arith.constant 0 : index
    %c0_11 = arith.constant 0 : index
    %5 = vector.load %arg1[%c0_9, %c0_10, %c0_11] : memref<4x96x256xf32, #tpu.memory_space<vmem>>, vector<1x96x256xf32>
    %6 = vector.shape_cast %5 : vector<1x96x256xf32> to vector<96x256xf32>
    %7 = arith.truncf %6 : vector<96x256xf32> to vector<96x256xbf16>
    %cst = arith.constant dense<0.000000e+00> : vector<96x256xf32>
    %8 = tpu.matmul %0, %7, %cst {dimension_numbers = #tpu.dot_dimension_numbers<[1], [0], [0], [1], [0, 0, 1, 1], [], []>} : vector<96x96xbf16>, vector<96x256xbf16>, vector<96x256xf32> -> vector<96x256xf32>
    %9 = vector.broadcast %1 : vector<96x1xf32> to vector<96x256xf32>
    %10 = arith.addf %8, %9 : vector<96x256xf32>
    %cst_12 = arith.constant 0.000000e+00 : f32
    %11 = vector.broadcast %cst_12 : f32 to vector<96x256xf32>
    %12 = arith.maximumf %10, %11 : vector<96x256xf32>
    %13 = arith.truncf %12 : vector<96x256xf32> to vector<96x256xbf16>
    %cst_13 = arith.constant dense<0.000000e+00> : vector<96x256xf32>
    %14 = tpu.matmul %2, %13, %cst_13 {dimension_numbers = #tpu.dot_dimension_numbers<[1], [0], [0], [1], [0, 0, 1, 1], [], []>} : vector<96x96xbf16>, vector<96x256xbf16>, vector<96x256xf32> -> vector<96x256xf32>
    %15 = vector.broadcast %3 : vector<96x1xf32> to vector<96x256xf32>
    %16 = arith.addf %14, %15 : vector<96x256xf32>
    %cst_14 = arith.constant 0.000000e+00 : f32
    %17 = vector.broadcast %cst_14 : f32 to vector<96x256xf32>
    %18 = arith.maximumf %16, %17 : vector<96x256xf32>
    %19 = arith.truncf %18 : vector<96x256xf32> to vector<96x256xbf16>
    %cst_15 = arith.constant dense<0.000000e+00> : vector<96x64xf32>
    %20 = tpu.matmul %19, %4, %cst_15 {dimension_numbers = #tpu.dot_dimension_numbers<[1], [0], [0], [1], [0, 0, 1, 1], [], []>} : vector<96x256xbf16>, vector<256x64xbf16>, vector<96x64xf32> -> vector<96x64xf32>
    %c0_16 = arith.constant 0 : index
    %c0_17 = arith.constant 0 : index
    %c0_18 = arith.constant 0 : index
    %21 = vector.load %arg7[%c0_16, %c0_17, %c0_18] : memref<1x96x256xf32, #tpu.memory_space<vmem>>, vector<1x96x64xf32>
    %22 = vector.shape_cast %21 : vector<1x96x64xf32> to vector<96x64xf32>
    %23 = vector.shape_cast %20 : vector<96x64xf32> to vector<1x96x64xf32>
    tpu.vector_store %arg7[%c0_16, %c0_17, %c0_18], %23 {strides = array<i32>} : memref<1x96x256xf32, #tpu.memory_space<vmem>>, vector<1x96x64xf32>,
    %c1 = arith.constant 1 : index
    %c0_19 = arith.constant 0 : index
    %c0_20 = arith.constant 0 : index
    %24 = vector.load %arg1[%c1, %c0_19, %c0_20] : memref<4x96x256xf32, #tpu.memory_space<vmem>>, vector<1x96x256xf32>
    %25 = vector.shape_cast %24 : vector<1x96x256xf32> to vector<96x256xf32>
    %26 = arith.truncf %25 : vector<96x256xf32> to vector<96x256xbf16>
    %cst_21 = arith.constant dense<0.000000e+00> : vector<96x256xf32>
    %27 = tpu.matmul %0, %26, %cst_21 {dimension_numbers = #tpu.dot_dimension_numbers<[1], [0], [0], [1], [0, 0, 1, 1], [], []>} : vector<96x96xbf16>, vector<96x256xbf16>, vector<96x256xf32> -> vector<96x256xf32>
    %28 = vector.broadcast %1 : vector<96x1xf32> to vector<96x256xf32>
    %29 = arith.addf %27, %28 : vector<96x256xf32>
    %cst_22 = arith.constant 0.000000e+00 : f32
    %30 = vector.broadcast %cst_22 : f32 to vector<96x256xf32>
    %31 = arith.maximumf %29, %30 : vector<96x256xf32>
    %32 = arith.truncf %31 : vector<96x256xf32> to vector<96x256xbf16>
    %cst_23 = arith.constant dense<0.000000e+00> : vector<96x256xf32>
    %33 = tpu.matmul %2, %32, %cst_23 {dimension_numbers = #tpu.dot_dimension_numbers<[1], [0], [0], [1], [0, 0, 1, 1], [], []>} : vector<96x96xbf16>, vector<96x256xbf16>, vector<96x256xf32> -> vector<96x256xf32>
    %34 = vector.broadcast %3 : vector<96x1xf32> to vector<96x256xf32>
    %35 = arith.addf %33, %34 : vector<96x256xf32>
    %cst_24 = arith.constant 0.000000e+00 : f32
    %36 = vector.broadcast %cst_24 : f32 to vector<96x256xf32>
    %37 = arith.maximumf %35, %36 : vector<96x256xf32>
    %38 = arith.truncf %37 : vector<96x256xf32> to vector<96x256xbf16>
    %cst_25 = arith.constant dense<0.000000e+00> : vector<96x64xf32>
    %39 = tpu.matmul %38, %4, %cst_25 {dimension_numbers = #tpu.dot_dimension_numbers<[1], [0], [0], [1], [0, 0, 1, 1], [], []>} : vector<96x256xbf16>, vector<256x64xbf16>, vector<96x64xf32> -> vector<96x64xf32>
    %c0_26 = arith.constant 0 : index
    %c0_27 = arith.constant 0 : index
    %c64 = arith.constant 64 : index
    %40 = vector.load %arg7[%c0_26, %c0_27, %c64] : memref<1x96x256xf32, #tpu.memory_space<vmem>>, vector<1x96x64xf32>
    %41 = vector.shape_cast %40 : vector<1x96x64xf32> to vector<96x64xf32>
    %42 = vector.shape_cast %39 : vector<96x64xf32> to vector<1x96x64xf32>
    tpu.vector_store %arg7[%c0_26, %c0_27, %c64], %42 {strides = array<i32>} : memref<1x96x256xf32, #tpu.memory_space<vmem>>, vector<1x96x64xf32>,
    %c2 = arith.constant 2 : index
    %c0_28 = arith.constant 0 : index
    %c0_29 = arith.constant 0 : index
    %43 = vector.load %arg1[%c2, %c0_28, %c0_29] : memref<4x96x256xf32, #tpu.memory_space<vmem>>, vector<1x96x256xf32>
    %44 = vector.shape_cast %43 : vector<1x96x256xf32> to vector<96x256xf32>
    %45 = arith.truncf %44 : vector<96x256xf32> to vector<96x256xbf16>
    %cst_30 = arith.constant dense<0.000000e+00> : vector<96x256xf32>
    %46 = tpu.matmul %0, %45, %cst_30 {dimension_numbers = #tpu.dot_dimension_numbers<[1], [0], [0], [1], [0, 0, 1, 1], [], []>} : vector<96x96xbf16>, vector<96x256xbf16>, vector<96x256xf32> -> vector<96x256xf32>
    %47 = vector.broadcast %1 : vector<96x1xf32> to vector<96x256xf32>
    %48 = arith.addf %46, %47 : vector<96x256xf32>
    %cst_31 = arith.constant 0.000000e+00 : f32
    %49 = vector.broadcast %cst_31 : f32 to vector<96x256xf32>
    %50 = arith.maximumf %48, %49 : vector<96x256xf32>
    %51 = arith.truncf %50 : vector<96x256xf32> to vector<96x256xbf16>
    %cst_32 = arith.constant dense<0.000000e+00> : vector<96x256xf32>
    %52 = tpu.matmul %2, %51, %cst_32 {dimension_numbers = #tpu.dot_dimension_numbers<[1], [0], [0], [1], [0, 0, 1, 1], [], []>} : vector<96x96xbf16>, vector<96x256xbf16>, vector<96x256xf32> -> vector<96x256xf32>
    %53 = vector.broadcast %3 : vector<96x1xf32> to vector<96x256xf32>
    %54 = arith.addf %52, %53 : vector<96x256xf32>
    %cst_33 = arith.constant 0.000000e+00 : f32
    %55 = vector.broadcast %cst_33 : f32 to vector<96x256xf32>
    %56 = arith.maximumf %54, %55 : vector<96x256xf32>
    %57 = arith.truncf %56 : vector<96x256xf32> to vector<96x256xbf16>
    %cst_34 = arith.constant dense<0.000000e+00> : vector<96x64xf32>
    %58 = tpu.matmul %57, %4, %cst_34 {dimension_numbers = #tpu.dot_dimension_numbers<[1], [0], [0], [1], [0, 0, 1, 1], [], []>} : vector<96x256xbf16>, vector<256x64xbf16>, vector<96x64xf32> -> vector<96x64xf32>
    %c0_35 = arith.constant 0 : index
    %c0_36 = arith.constant 0 : index
    %c128 = arith.constant 128 : index
    %59 = vector.load %arg7[%c0_35, %c0_36, %c128] : memref<1x96x256xf32, #tpu.memory_space<vmem>>, vector<1x96x64xf32>
    %60 = vector.shape_cast %59 : vector<1x96x64xf32> to vector<96x64xf32>
    %61 = vector.shape_cast %58 : vector<96x64xf32> to vector<1x96x64xf32>
    tpu.vector_store %arg7[%c0_35, %c0_36, %c128], %61 {strides = array<i32>} : memref<1x96x256xf32, #tpu.memory_space<vmem>>, vector<1x96x64xf32>,
    %c3 = arith.constant 3 : index
    %c0_37 = arith.constant 0 : index
    %c0_38 = arith.constant 0 : index
    %62 = vector.load %arg1[%c3, %c0_37, %c0_38] : memref<4x96x256xf32, #tpu.memory_space<vmem>>, vector<1x96x256xf32>
    %63 = vector.shape_cast %62 : vector<1x96x256xf32> to vector<96x256xf32>
    %64 = arith.truncf %63 : vector<96x256xf32> to vector<96x256xbf16>
    %cst_39 = arith.constant dense<0.000000e+00> : vector<96x256xf32>
    %65 = tpu.matmul %0, %64, %cst_39 {dimension_numbers = #tpu.dot_dimension_numbers<[1], [0], [0], [1], [0, 0, 1, 1], [], []>} : vector<96x96xbf16>, vector<96x256xbf16>, vector<96x256xf32> -> vector<96x256xf32>
    %66 = vector.broadcast %1 : vector<96x1xf32> to vector<96x256xf32>
    %67 = arith.addf %65, %66 : vector<96x256xf32>
    %cst_40 = arith.constant 0.000000e+00 : f32
    %68 = vector.broadcast %cst_40 : f32 to vector<96x256xf32>
    %69 = arith.maximumf %67, %68 : vector<96x256xf32>
    %70 = arith.truncf %69 : vector<96x256xf32> to vector<96x256xbf16>
    %cst_41 = arith.constant dense<0.000000e+00> : vector<96x256xf32>
    %71 = tpu.matmul %2, %70, %cst_41 {dimension_numbers = #tpu.dot_dimension_numbers<[1], [0], [0], [1], [0, 0, 1, 1], [], []>} : vector<96x96xbf16>, vector<96x256xbf16>, vector<96x256xf32> -> vector<96x256xf32>
    %72 = vector.broadcast %3 : vector<96x1xf32> to vector<96x256xf32>
    %73 = arith.addf %71, %72 : vector<96x256xf32>
    %cst_42 = arith.constant 0.000000e+00 : f32
    %74 = vector.broadcast %cst_42 : f32 to vector<96x256xf32>
    %75 = arith.maximumf %73, %74 : vector<96x256xf32>
    %76 = arith.truncf %75 : vector<96x256xf32> to vector<96x256xbf16>
    %cst_43 = arith.constant dense<0.000000e+00> : vector<96x64xf32>
    %77 = tpu.matmul %76, %4, %cst_43 {dimension_numbers = #tpu.dot_dimension_numbers<[1], [0], [0], [1], [0, 0, 1, 1], [], []>} : vector<96x256xbf16>, vector<256x64xbf16>, vector<96x64xf32> -> vector<96x64xf32>
    %c0_44 = arith.constant 0 : index
    %c0_45 = arith.constant 0 : index
    %c192 = arith.constant 192 : index
    %78 = vector.load %arg7[%c0_44, %c0_45, %c192] : memref<1x96x256xf32, #tpu.memory_space<vmem>>, vector<1x96x64xf32>
    %79 = vector.shape_cast %78 : vector<1x96x64xf32> to vector<96x64xf32>
    %80 = vector.shape_cast %77 : vector<96x64xf32> to vector<1x96x64xf32>
    tpu.vector_store %arg7[%c0_44, %c0_45, %c192], %80 {strides = array<i32>} : memref<1x96x256xf32, #tpu.memory_space<vmem>>, vector<1x96x64xf32>,
    return
  }
  func.func @transform_0(%arg0: i32) -> (i32, i32, i32) {
    %c0_i32 = arith.constant 0 : i32
    %c0_i32_0 = arith.constant 0 : i32
    %c0_i32_1 = arith.constant 0 : i32
    return %arg0, %c0_i32, %c0_i32_0 : i32, i32, i32
  }
  func.func @transform_1(%arg0: i32) -> (i32, i32) {
    %c0_i32 = arith.constant 0 : i32
    %c0_i32_0 = arith.constant 0 : i32
    %c0_i32_1 = arith.constant 0 : i32
    return %c0_i32, %c0_i32_0 : i32, i32
  }
  func.func @transform_2(%arg0: i32) -> (i32, i32) {
    %c0_i32 = arith.constant 0 : i32
    %c0_i32_0 = arith.constant 0 : i32
    %c0_i32_1 = arith.constant 0 : i32
    return %c0_i32, %c0_i32_0 : i32, i32
  }
  func.func @transform_3(%arg0: i32) -> (i32, i32) {
    %c0_i32 = arith.constant 0 : i32
    %c0_i32_0 = arith.constant 0 : i32
    %c0_i32_1 = arith.constant 0 : i32
    return %c0_i32, %c0_i32_0 : i32, i32
  }
  func.func @transform_4(%arg0: i32) -> (i32, i32) {
    %c0_i32 = arith.constant 0 : i32
    %c0_i32_0 = arith.constant 0 : i32
    %c0_i32_1 = arith.constant 0 : i32
    return %c0_i32, %c0_i32_0 : i32, i32
  }
  func.func @transform_5(%arg0: i32) -> (i32, i32) {
    %c0_i32 = arith.constant 0 : i32
    %c0_i32_0 = arith.constant 0 : i32
    %c0_i32_1 = arith.constant 0 : i32
    return %c0_i32, %c0_i32_0 : i32, i32
  }
  func.func @transform_6(%arg0: i32) -> (i32, i32, i32) {
    %c0_i32 = arith.constant 0 : i32
    %c0_i32_0 = arith.constant 0 : i32
    %c0_i32_1 = arith.constant 0 : i32
    return %arg0, %c0_i32, %c0_i32_0 : i32, i32, i32
  }
}

</mosaic_0001>

<bundles_post_ra>
// kernel: subnet_forward.1
= control target key start
LH: loop header
LB: loop body
LE: loop exit
PB: predicated region body
PF: predicated region fallthrough
CT: control target
= control target key end

     0   :  { %s2836_s21 = smov 0   ;;  %s3832_s0 = inlined_call_operand.vmem [shape: f32[8,96,256], index: 0, kind: input, shape index: {}]   ;;  %s3833_s1 = inlined_call_operand.vmem [shape: bf16[96,96], index: 1, kind: input, shape index: {}]   ;;  %s3834_s2 = inlined_call_operand.vmem [shape: f32[96,1], index: 2, kind: input, shape index: {}]   ;;  %s3835_s3 = inlined_call_operand.vmem [shape: bf16[96,96], index: 3, kind: input, shape index: {}]   ;;  %s3836_s4 = inlined_call_operand.vmem [shape: f32[96,1], index: 4, kind: input, shape index: {}]   ;;  %s3837_s5 = inlined_call_operand.vmem [shape: bf16[256,64], index: 5, kind: input, shape index: {}]   ;;  %s3838_s6 = inlined_call_operand.vmem [shape: f32[2,96,256], index: 6, kind: output, shape index: {}]  }
   0x1 LB: > { %s2842_s22 = sadd.s32 4294967295, %s2797_s21   ;;  %p2359_p0 = scmp.ge.s32.totalorder %s2797_s21, 1  ;;  %s2797_s21 = sphi %s2836_s21, %s16_s21  }
   0x2   : > { %p214_p1 = scmp.lt.s32.totalorder %s2797_s21, 3 }
   0x4   : > { %p215_p2 = pnand %p2359_p0, %p214_p1 }
   0x6   : > { %218 = sbr.rel (%p215_p2) target bundleno = 1846 (0x736), region = 44 }
   0xd   : > { %s2360_s23 = sshll.u32 %s2842_s22, 2  ;;  %v3839_v0 = vmov 0   ;;  %v270_v1 = vld [vmem:[%s3834_s2] sm:$0xff]  ;;  %v272_v2 = vld [vmem:[%s3834_s2 + $0x10] sm:$0xff]  ;;  %v271_v3 = vld [vmem:[%s3834_s2 + $0x8] sm:$0xff]  ;;  %vm464_vm0 = vcmask 785408  }
   0xe   : > { %p246_p3 = scmp.lt.s32.totalorder %s2360_s23, 7  ;;  %515 = vmatprep.mubr.bf16.mxu0 %v3839_v0  ;;  %2733 = vset.pattern.permute.xlu0 %v3839_v0  ;;  %v273_v4 = vld [vmem:[%s3834_s2 + $0x18] sm:$0xff]  ;;  %v274_v19 = vld [vmem:[%s3834_s2 + $0x20] sm:$0xff]  ;;  %v275_v26 = vld [vmem:[%s3834_s2 + $0x28] sm:$0xff]  ;;  %p252_p4 = scmp.lt.s32.totalorder %s2842_s22, 1  ;;  %vm1026_vm1 = vcmask 523264  }
   0xf   : > { %2734 = vset.pattern.permute.xlu1 %v3839_v0  ;;  %752 = vmatprep.mubr.bf16.mxu1 %v3839_v0  ;;  %v276_v27 = vld [vmem:[%s3834_s2 + $0x30] sm:$0xff]  ;;  %v277_v33 = vld [vmem:[%s3834_s2 + $0x38] sm:$0xff]  ;;  %v278_v37 = vld [vmem:[%s3834_s2 + $0x40] sm:$0xff]  ;;  %vm1463_vm2 = vcmask 1048064  }
  0x10   : > { %s3851_s23 = smov (!%p246_p3, %s2360_s23), 7  ;;  %376 = vperm.xlu0 %2733, %v270_v1   ;;  %386 = vperm.xlu1 %2734, %v272_v2   ;;  %v279_v41 = vld [vmem:[%s3834_s2 + $0x48] sm:$0xff]  ;;  %v280_v42 = vld [vmem:[%s3834_s2 + $0x50] sm:$0xff]  ;;  %v281_v46 = vld [vmem:[%s3834_s2 + $0x58] sm:$0xff]  ;;  %s3853_s22 = smov (!%p252_p4, %s2842_s22), 1 }
  0x11   : > { %s2721_s24 = smul.u32 192, %s3851_s23  ;;  %v294_v48 = vld [vmem:[%s3836_s4] sm:$0xff]  ;;  %v295_v50 = vld [vmem:[%s3836_s4 + $0x8] sm:$0xff]  ;;  %v296_v52 = vld [vmem:[%s3836_s4 + $0x10] sm:$0xff] }
  0x12   : > { %v2925_v51 = vld [vmem:[%s3833_s1] sm:$0xff]   ;;  %v297_v53 = vld [vmem:[%s3836_s4 + $0x18] sm:$0xff]  ;;  %v299_v55 = vld [vmem:[%s3836_s4 + $0x28] sm:$0xff]  ;;  %s2722_s15 = smul.u32 192, %s3853_s22  ;;  %s2800_s22 = smov 64  }
  0x13   : > { %s2860_s7 = scalar_lea.vmem %s3832_s0, %s2721_s24  ;;  %v298_v54 = vld [vmem:[%s3836_s4 + $0x20] sm:$0xff]  ;;  %v2945_v56 = vld [vmem:[%s3833_s1 + $0x8] sm:$0xff]   ;;  %v300_v57 = vld [vmem:[%s3836_s4 + $0x30] sm:$0xff] }
  0x14   : > { %v339_v5 = vld [vmem:[%s2860_s7 + $0x8] sm:$0xff]  ;;  %v341_v6 = vld [vmem:[%s2860_s7 + $0x18] sm:$0xff]  ;;  %v338_v7 = vld [vmem:[%s2860_s7] sm:$0xff]  ;;  %381 = vperm.xlu0 %2733, %v271_v3   ;;  %391 = vperm.xlu1 %2734, %v273_v4   ;;  %s3431_s18 = scalar_lea.vmem %s3838_s6, %s2722_s15 }
  0x15   : > { %v363_v8 = vpack.c.bf16 %v341_v6, %v339_v5  ;;  %v340_v9 = vld [vmem:[%s2860_s7 + $0x10] sm:$0xff]  ;;  %v343_v10 = vld [vmem:[%s2860_s7 + $0x28] sm:$0xff]  ;;  %v345_v11 = vld [vmem:[%s2860_s7 + $0x38] sm:$0xff] }
  0x16   : > { %v362_v12 = vpack.c.bf16 %v340_v9, %v338_v7  ;;  %v365_v13 = vpack.c.bf16 %v345_v11, %v343_v10  ;;  %v342_v14 = vld [vmem:[%s2860_s7 + $0x20] sm:$0xff]  ;;  %v344_v15 = vld [vmem:[%s2860_s7 + $0x30] sm:$0xff]  ;;  %v347_v16 = vld [vmem:[%s2860_s7 + $0x48] sm:$0xff] }
  0x17   : > { %483 = vmatprep.subr.bf16.mxu0 %v363_v8  ;;  %v349_v17 = vld [vmem:[%s2860_s7 + $0x58] sm:$0xff]  ;;  %v364_v18 = vpack.c.bf16 %v344_v15, %v342_v14  ;;  %v346_v21 = vld [vmem:[%s2860_s7 + $0x40] sm:$0xff]  ;;  %v348_v22 = vld [vmem:[%s2860_s7 + $0x50] sm:$0xff] }
  0x18   : > { %484 = vmatpush1.bf16.msra.mxu0 %v362_v12  ;;  %v367_v20 = vpack.c.bf16 %v349_v17, %v347_v16  ;;  %v351_v23 = vld [vmem:[%s2860_s7 + $0x68] sm:$0xff]  ;;  %v353_v24 = vld [vmem:[%s2860_s7 + $0x78] sm:$0xff]  ;;  %396 = vperm.xlu0 %2733, %v274_v19   ;;  %v366_v25 = vpack.c.bf16 %v348_v22, %v346_v21  ;;  %v350_v29 = vld [vmem:[%s2860_s7 + $0x60] sm:$0xff] }
  0x19   : > { %485 = vmatprep.subr.bf16.mxu0 %v365_v13  ;;  %v369_v28 = vpack.c.bf16 %v353_v24, %v351_v23  ;;  %v352_v30 = vld [vmem:[%s2860_s7 + $0x70] sm:$0xff]  ;;  %401 = vperm.xlu1 %2734, %v275_v26   ;;  %v355_v31 = vld [vmem:[%s2860_s7 + $0x88] sm:$0xff]  ;;  %v357_v32 = vld [vmem:[%s2860_s7 + $0x98] sm:$0xff] }
  0x1a   : > { %v368_v34 = vpack.c.bf16 %v352_v30, %v350_v29  ;;  %v354_v35 = vld [vmem:[%s2860_s7 + $0x80] sm:$0xff]  ;;  %v356_v36 = vld [vmem:[%s2860_s7 + $0x90] sm:$0xff]  ;;  %v371_v38 = vpack.c.bf16 %v357_v32, %v355_v31  ;;  %v359_v39 = vld [vmem:[%s2860_s7 + $0xa8] sm:$0xff] }
  0x1b   : > { %v361_v40 = vld [vmem:[%s2860_s7 + $0xb8] sm:$0xff]  ;;  %v358_v43 = vld [vmem:[%s2860_s7 + $0xa0] sm:$0xff]  ;;  %v360_v44 = vld [vmem:[%s2860_s7 + $0xb0] sm:$0xff]  ;;  %v370_v45 = vpack.c.bf16 %v356_v36, %v354_v35 }
  0x1c   : > { %486 = vmatpush1.bf16.msra.mxu0 %v364_v18  ;;  %406 = vperm.xlu0 %2733, %v276_v27   ;;  %v373_v47 = vpack.c.bf16 %v361_v40, %v359_v39  ;;  %v372_v49 = vpack.c.bf16 %v360_v44, %v358_v43  ;;  %v301_v58 = vld [vmem:[%s3836_s4 + $0x38] sm:$0xff]  ;;  %v302_v59 = vld [vmem:[%s3836_s4 + $0x40] sm:$0xff]  ;;  %v303_v60 = vld [vmem:[%s3836_s4 + $0x48] sm:$0xff] }
  0x1d   : > { %487 = vmatprep.subr.bf16.mxu0 %v367_v20  ;;  %411 = vperm.xlu1 %2734, %v277_v33   ;;  %v2965_v61 = vld [vmem:[%s3833_s1 + $0x10] sm:$0xff]   ;;  %v305_v63 = vld [vmem:[%s3836_s4 + $0x58] sm:$0xff]  ;;  %v2987_v2 = vld [vmem:[%s3833_s1 + $0x20] sm:$0xff]  }
  0x1e   : > { %v304_v62 = vld [vmem:[%s3836_s4 + $0x50] sm:$0xff]  ;;  %v2979_v1 = vld [vmem:[%s3833_s1 + $0x18] sm:$0xff]   ;;  %v2995_v3 = vld [vmem:[%s3833_s1 + $0x28] sm:$0xff]  }
  0x1f   : > { %v3023_v35 = vld [vmem:[%s3837_s5] sm:$0xff]   ;;  %v3028_v36 = vld [vmem:[%s3837_s5 + $0x48] sm:$0xff]  }
  0x20   : > { %488 = vmatpush1.bf16.msra.mxu0 %v366_v25  ;;  %416 = vperm.xlu0 %2733, %v278_v37   ;;  %v3038_v43 = vld [vmem:[%s3837_s5 + $0x8] sm:$0xff]  }
  0x21   : > { %489 = vmatprep.subr.bf16.mxu0 %v369_v28  ;;  %421 = vperm.xlu1 %2734, %v279_v41  }
  0x24   : > { %490 = vmatpush1.bf16.msra.mxu0 %v368_v34  ;;  %426 = vperm.xlu0 %2733, %v280_v42   ;;  %v3018_v34 = vld [vmem:[%s3837_s5 + $0x40] sm:$0xff]  }
  0x25   : > { %491 = vmatprep.subr.bf16.mxu0 %v371_v38  ;;  %431 = vperm.xlu1 %2734, %v281_v46  }
  0x28   : > { %492 = vmatpush1.bf16.msra.mxu0 %v370_v45  ;;  %614 = vperm.xlu0 %2733, %v294_v48  }
  0x29   : > { %493 = vmatprep.subr.bf16.mxu0 %v373_v47  ;;  %619 = vperm.xlu1 %2734, %v295_v50   ;;  %v3047_v47 = vld [vmem:[%s3837_s5 + $0x50] sm:$0xff]  }
  0x2c   : > { %494 = vmatpush1.bf16.msra.mxu0 %v372_v49  ;;  %624 = vperm.xlu0 %2733, %v296_v52  }
  0x2d   : > { %629 = vperm.xlu1 %2734, %v297_v53   ;;  %2513 = vmatprep.subr.bf16.mxu0 %v3018_v34 }
  0x2f   : > { %2369 = vmatmul.mubr.msk.bf16.vlgmr.msra.gmra.mrb[0].mxu0 %vm464_vm0, %v2925_v51 }
  0x30   : > { %525 = vmatprep.mubr.bf16.mxu0 %v3839_v0  ;;  %634 = vperm.xlu0 %2733, %v298_v54   ;;  %v3055_v54 = vld [vmem:[%s3837_s5 + $0x10] sm:$0xff]  }
  0x31   : > { %639 = vperm.xlu1 %2734, %v299_v55   ;;  %2514 = vmatpush3.bf16.msra.mxu0 %v3023_v35 }
  0x32   : > { %2515 = vmatprep.subr.bf16.mxu0 %v3028_v36 }
  0x34   : > { %644 = vperm.xlu0 %2733, %v300_v57  }
  0x35   : > { %649 = vperm.xlu1 %2734, %v301_v58   ;;  %2516 = vmatpush3.bf16.msra.mxu0 %v3038_v43  ;;  %v3061_v58 = vld [vmem:[%s3837_s5 + $0x58] sm:$0xff]  }
  0x36   : > { %2517 = vmatprep.subr.bf16.mxu0 %v3047_v47 }
  0x37   : > { %2370 = vmatmul.mubr.msk.bf16.gmra.mrb[4].mxu0 %vm464_vm0, %v2945_v56 }
  0x38   : > { %535 = vmatprep.mubr.bf16.mxu0 %v3839_v0  ;;  %654 = vperm.xlu0 %2733, %v302_v59  }
  0x39   : > { %659 = vperm.xlu1 %2734, %v303_v60   ;;  %2518 = vmatpush3.bf16.msra.mxu0 %v3055_v54 }
  0x3a   : > { %2519 = vmatprep.subr.bf16.mxu0 %v3061_v58 }
  0x3c   : > { %664 = vperm.xlu0 %2733, %v304_v62  }
  0x3d   : > { %669 = vperm.xlu1 %2734, %v305_v63  }
  0x3f   : > { %2371 = vmatmul.mubr.msk.bf16.gmra.mrb[8].mxu0 %vm464_vm0, %v2965_v61 }
  0x40   : > { %545 = vmatprep.mubr.bf16.mxu0 %v3839_v0 }
  0x47   : > { %2372 = vmatmul.mubr.msk.bf16.gmra.mrb[12].mxu0 %vm464_vm0, %v2979_v1 }
  0x48   : > { %555 = vmatprep.mubr.bf16.mxu0 %v3839_v0 }
  0x4f   : > { %2373 = vmatmul.mubr.msk.bf16.gmra.mrb[16].mxu0 %vm464_vm0, %v2987_v2 }
  0x50   : > { %565 = vmatprep.mubr.bf16.mxu0 %v3839_v0 }
  0x57   : > { %2374 = vmatmul.mubr.msk.bf16.gmra.mrb[20].mxu0 %vm464_vm0, %v2995_v3 }
  0x8f   : > { %v2999_v4 = vpop.permute.xlu0 %376  ;;  %v3006_v13 = vpop.permute.xlu1 %386 }
  0x90   : > { %3845 = vst [vmem:[#allocation2_spill] sm:$0xff] %v2999_v4  ;;  %3846 = vst [vmem:[#allocation3_spill] sm:$0xff] %v3006_v13 }
  0x93   : > { %v3002_v8 = vpop.permute.xlu0 %381  ;;  %v3010_v24 = vpop.permute.xlu1 %391 }
  0x97   : > { %v3030_v38 = vpop.permute.xlu0 %396 }
  0x98   : > { %v3040_v44 = vpop.permute.xlu1 %401 }
  0x9b   : > { %v3063_v60 = vpop.permute.xlu0 %406 }
 0x102   : > { %v517_v5 = vpop.f32.mrb[0].mxu0 }
 0x103   : > { %v518_v6 = vadd.f32 %v517_v5, %v2999_v4  ;;  %v519_v7 = vpop.f32.mrb[1].mxu0 }
 0x104   : > { %v520_v9 = vadd.f32 %v519_v7, %v2999_v4  ;;  %v521_v10 = vpop.f32.mrb[2].mxu0  ;;  %v3070_v7 = vld [vmem:[%s3837_s5 + $0x18] sm:$0xff]  }
 0x105   : > { %v522_v11 = vadd.f32 %v521_v10, %v3002_v8  ;;  %v523_v12 = vpop.f32.mrb[3].mxu0  ;;  %v576_v15 = vmax.f32 %v518_v6, 0.0  ;;  %2520 = vmatpush3.bf16.msra.mxu0 %v3070_v7 }
 0x106   : > { %v524_v14 = vadd.f32 %v523_v12, %v3002_v8  ;;  %v577_v17 = vmax.f32 %v520_v9, 0.0  ;;  %v3072_v9 = vpop.permute.xlu1 %411  ;;  %v3079_v12 = vld [vmem:[%s3837_s5 + $0x60] sm:$0xff]  }
 0x107   : > { %v578_v16 = vmax.f32 %v522_v11, 0.0  ;;  %2521 = vmatprep.subr.bf16.mxu0 %v3079_v12 }
 0x108   : > { %v579_v18 = vmax.f32 %v524_v14, 0.0 }
 0x109   : > { %v600_v19 = vpack.c.bf16 %v578_v16, %v576_v15 }
 0x10a   : > { %v527_v20 = vpop.f32.mrb[4].mxu0  ;;  %v601_v21 = vpack.c.bf16 %v579_v18, %v577_v17 }
 0x10b   : > { %v528_v22 = vadd.f32 %v527_v20, %v3006_v13  ;;  %v529_v23 = vpop.f32.mrb[5].mxu0 }
 0x10c   : > { %v530_v25 = vadd.f32 %v529_v23, %v3006_v13  ;;  %v531_v26 = vpop.f32.mrb[6].mxu0  ;;  %720 = vmatprep.subr.bf16.mxu1 %v601_v21 }
 0x10d   : > { %v532_v27 = vadd.f32 %v531_v26, %v3010_v24  ;;  %v533_v28 = vpop.f32.mrb[7].mxu0  ;;  %721 = vmatpush1.bf16.msra.mxu1 %v600_v19  ;;  %v580_v30 = vmax.f32 %v528_v22, 0.0  ;;  %v3087_v19 = vld [vmem:[%s3837_s5 + $0x20] sm:$0xff]   ;;  %v3093_v22 = vld [vmem:[%s3837_s5 + $0x68] sm:$0xff]  }
 0x10e   : > { %v534_v29 = vadd.f32 %v533_v28, %v3010_v24  ;;  %v581_v32 = vmax.f32 %v530_v25, 0.0  ;;  %v3095_v25 = vpop.permute.xlu0 %416  ;;  %2522 = vmatpush3.bf16.msra.mxu0 %v3087_v19 }
 0x10f   : > { %v582_v31 = vmax.f32 %v532_v27, 0.0  ;;  %2523 = vmatprep.subr.bf16.mxu0 %v3093_v22 }
 0x110   : > { %v583_v33 = vmax.f32 %v534_v29, 0.0 }
 0x111   : > { %v602_v37 = vpack.c.bf16 %v582_v31, %v580_v30  ;;  %v3099_v30 = vpop.permute.xlu1 %421 }
 0x112   : > { %v603_v39 = vpack.c.bf16 %v583_v33, %v581_v32  ;;  %v537_v40 = vpop.f32.mrb[8].mxu0 }
 0x113   : > { %v538_v41 = vadd.f32 %v537_v40, %v3030_v38  ;;  %v539_v42 = vpop.f32.mrb[9].mxu0 }
 0x114   : > { %v540_v45 = vadd.f32 %v539_v42, %v3030_v38  ;;  %v541_v46 = vpop.f32.mrb[10].mxu0  ;;  %722 = vmatprep.subr.bf16.mxu1 %v603_v39 }
 0x115   : > { %v542_v48 = vadd.f32 %v541_v46, %v3040_v44  ;;  %v543_v49 = vpop.f32.mrb[11].mxu0  ;;  %723 = vmatpush1.bf16.msra.mxu1 %v602_v37  ;;  %v584_v52 = vmax.f32 %v538_v41, 0.0 }
 0x116   : > { %v544_v50 = vadd.f32 %v543_v49, %v3040_v44  ;;  %v585_v55 = vmax.f32 %v540_v45, 0.0 }
 0x117   : > { %v586_v53 = vmax.f32 %v542_v48, 0.0  ;;  %v3105_v48 = vpop.permute.xlu0 %426 }
 0x118   : > { %v587_v57 = vmax.f32 %v544_v50, 0.0 }
 0x119   : > { %v604_v59 = vpack.c.bf16 %v586_v53, %v584_v52 }
 0x11a   : > { %v605_v62 = vpack.c.bf16 %v587_v57, %v585_v55  ;;  %v547_v63 = vpop.f32.mrb[12].mxu0  ;;  %v3108_v55 = vpop.permute.xlu1 %431 }
 0x11b   : > { %v548_v5 = vadd.f32 %v547_v63, %v3063_v60  ;;  %v549_v6 = vpop.f32.mrb[13].mxu0 }
 0x11c   : > { %v550_v10 = vadd.f32 %v549_v6, %v3063_v60  ;;  %v551_v11 = vpop.f32.mrb[14].mxu0  ;;  %724 = vmatprep.subr.bf16.mxu1 %v605_v62 }
 0x11d   : > { %v552_v14 = vadd.f32 %v551_v11, %v3072_v9  ;;  %v553_v15 = vpop.f32.mrb[15].mxu0  ;;  %725 = vmatpush1.bf16.msra.mxu1 %v604_v59  ;;  %v588_v17 = vmax.f32 %v548_v5, 0.0  ;;  %v2404_v11 = vld [vmem:[%s2860_s7 + $0xc8] sm:$0xff] }
 0x11e   : > { %v554_v16 = vadd.f32 %v553_v15, %v3072_v9  ;;  %v589_v20 = vmax.f32 %v550_v10, 0.0 }
 0x11f   : > { %v590_v18 = vmax.f32 %v552_v14, 0.0  ;;  %v2406_v14 = vld [vmem:[%s2860_s7 + $0xd8] sm:$0xff] }
 0x120   : > { %v591_v21 = vmax.f32 %v554_v16, 0.0 }
 0x121   : > { %v606_v23 = vpack.c.bf16 %v590_v18, %v588_v17 }
 0x122   : > { %v607_v26 = vpack.c.bf16 %v591_v21, %v589_v20  ;;  %v557_v27 = vpop.f32.mrb[16].mxu0  ;;  %v1065_v20 = vpack.c.bf16 %v2406_v14, %v2404_v11  ;;  %v2403_v21 = vld [vmem:[%s2860_s7 + $0xc0] sm:$0xff]  ;;  %v2421_v11 = vld [vmem:[%s2860_s7 + $0x150] sm:$0xff]  ;;  %v2424_v14 = vld [vmem:[%s2860_s7 + $0x168] sm:$0xff] }
 0x123   : > { %v558_v28 = vadd.f32 %v557_v27, %v3095_v25  ;;  %v559_v29 = vpop.f32.mrb[17].mxu0  ;;  %v2410_v27 = vld [vmem:[%s2860_s7 + $0xf8] sm:$0xff] }
 0x124   : > { %v560_v31 = vadd.f32 %v559_v29, %v3095_v25  ;;  %v561_v32 = vpop.f32.mrb[18].mxu0  ;;  %726 = vmatprep.subr.bf16.mxu1 %v607_v26  ;;  %v2408_v26 = vld [vmem:[%s2860_s7 + $0xe8] sm:$0xff] }
 0x125   : > { %v562_v33 = vadd.f32 %v561_v32, %v3099_v30  ;;  %v563_v37 = vpop.f32.mrb[19].mxu0  ;;  %727 = vmatpush1.bf16.msra.mxu1 %v606_v23  ;;  %v592_v40 = vmax.f32 %v558_v28, 0.0  ;;  %v2405_v23 = vld [vmem:[%s2860_s7 + $0xd0] sm:$0xff]  ;;  %v3122_v28 = vld [vmem:[%s3835_s3] sm:$0xff]  }
 0x126   : > { %v564_v39 = vadd.f32 %v563_v37, %v3099_v30  ;;  %v593_v42 = vmax.f32 %v560_v31, 0.0  ;;  %v1064_v29 = vpack.c.bf16 %v2405_v23, %v2403_v21  ;;  %v1067_v31 = vpack.c.bf16 %v2410_v27, %v2408_v26  ;;  %v2407_v32 = vld [vmem:[%s2860_s7 + $0xe0] sm:$0xff]  ;;  %v2412_v37 = vld [vmem:[%s2860_s7 + $0x108] sm:$0xff]  ;;  %v2425_v21 = vld [vmem:[%s2860_s7 + $0x170] sm:$0xff] }
 0x127   : > { %v594_v41 = vmax.f32 %v562_v33, 0.0  ;;  %v2409_v33 = vld [vmem:[%s2860_s7 + $0xf0] sm:$0xff]  ;;  %v3164_v26 = vld [vmem:[%s3835_s3 + $0x18] sm:$0xff]   ;;  %v3173_v27 = vld [vmem:[%s3835_s3 + $0x20] sm:$0xff]  }
 0x128   : > { %v595_v45 = vmax.f32 %v564_v39, 0.0  ;;  %v2414_v39 = vld [vmem:[%s2860_s7 + $0x118] sm:$0xff] }
 0x129   : > { %v608_v46 = vpack.c.bf16 %v594_v41, %v592_v40  ;;  %v1066_v40 = vpack.c.bf16 %v2409_v33, %v2407_v32  ;;  %v1069_v41 = vpack.c.bf16 %v2414_v39, %v2412_v37  ;;  %v3251_v37 = vpop.permute.xlu1 %619 }
 0x12a   : > { %v609_v49 = vpack.c.bf16 %v595_v45, %v593_v42  ;;  %v567_v50 = vpop.f32.mrb[20].mxu0  ;;  %v2411_v42 = vld [vmem:[%s2860_s7 + $0x100] sm:$0xff]  ;;  %v2413_v45 = vld [vmem:[%s2860_s7 + $0x110] sm:$0xff] }
 0x12b   : > { %v568_v52 = vadd.f32 %v567_v50, %v3105_v48  ;;  %v569_v53 = vpop.f32.mrb[21].mxu0  ;;  %v3138_v50 = vld [vmem:[%s3835_s3 + $0x8] sm:$0xff]  }
 0x12c   : > { %v570_v57 = vadd.f32 %v569_v53, %v3105_v48  ;;  %v571_v59 = vpop.f32.mrb[22].mxu0  ;;  %728 = vmatprep.subr.bf16.mxu1 %v609_v49  ;;  %v2418_v49 = vld [vmem:[%s2860_s7 + $0x138] sm:$0xff] }
 0x12d   : > { %v572_v62 = vadd.f32 %v571_v59, %v3108_v55  ;;  %v573_v63 = vpop.f32.mrb[23].mxu0  ;;  %729 = vmatpush1.bf16.msra.mxu1 %v608_v46  ;;  %v596_v6 = vmax.f32 %v568_v52, 0.0  ;;  %v2416_v46 = vld [vmem:[%s2860_s7 + $0x128] sm:$0xff]  ;;  %v1068_v52 = vpack.c.bf16 %v2413_v45, %v2411_v42  ;;  %v2417_v59 = vld [vmem:[%s2860_s7 + $0x130] sm:$0xff] }
 0x12e   : > { %v574_v5 = vadd.f32 %v573_v63, %v3108_v55  ;;  %v597_v15 = vmax.f32 %v570_v57, 0.0  ;;  %v1071_v53 = vpack.c.bf16 %v2418_v49, %v2416_v46  ;;  %v2415_v57 = vld [vmem:[%s2860_s7 + $0x120] sm:$0xff]  ;;  %v2422_v63 = vld [vmem:[%s2860_s7 + $0x158] sm:$0xff] }
 0x12f   : > { %v598_v10 = vmax.f32 %v572_v62, 0.0  ;;  %v2420_v62 = vld [vmem:[%s2860_s7 + $0x148] sm:$0xff] }
 0x130   : > { %v599_v16 = vmax.f32 %v574_v5, 0.0  ;;  %v1070_v5 = vpack.c.bf16 %v2417_v59, %v2415_v57 }
 0x131   : > { %v610_v17 = vpack.c.bf16 %v598_v10, %v596_v6  ;;  %v1073_v6 = vpack.c.bf16 %v2422_v63, %v2420_v62  ;;  %v2419_v10 = vld [vmem:[%s2860_s7 + $0x140] sm:$0xff] }
 0x132   : > { %v611_v18 = vpack.c.bf16 %v599_v16, %v597_v15  ;;  %v2426_v15 = vld [vmem:[%s2860_s7 + $0x178] sm:$0xff]  ;;  %v3154_v16 = vld [vmem:[%s3835_s3 + $0x10] sm:$0xff]  }
 0x134   : > { %730 = vmatprep.subr.bf16.mxu1 %v611_v18  ;;  %v1075_v18 = vpack.c.bf16 %v2426_v15, %v2424_v14 }
 0x135   : > { %731 = vmatpush1.bf16.msra.mxu1 %v610_v17  ;;  %v1072_v17 = vpack.c.bf16 %v2421_v11, %v2419_v10  ;;  %v3259_v10 = vpop.permute.xlu1 %629 }
 0x136   : > { %1076 = vmatprep.subr.bf16.mxu1 %v1065_v20  ;;  %v2423_v20 = vld [vmem:[%s2860_s7 + $0x160] sm:$0xff] }
 0x137   : > { %v1074_v23 = vpack.c.bf16 %v2425_v21, %v2423_v20 }
 0x138   : > { %2381 = vmatmul.mubr.msk.bf16.vlgmr.msra.gmra.mrb[0].mxu1 %vm464_vm0, %v3122_v28 }
 0x139   : > { %1077 = vmatpush1.bf16.msra.mxu1 %v1064_v29  ;;  %762 = vmatprep.mubr.bf16.mxu1 %v3839_v0  ;;  %v3181_v29 = vld [vmem:[%s3835_s3 + $0x28] sm:$0xff]  }
 0x13a   : > { %1078 = vmatprep.subr.bf16.mxu1 %v1067_v31  ;;  %v3248_v31 = vpop.permute.xlu0 %614 }
 0x13d   : > { %1079 = vmatpush1.bf16.msra.mxu1 %v1066_v40 }
 0x13e   : > { %1080 = vmatprep.subr.bf16.mxu1 %v1069_v41  ;;  %v3256_v59 = vpop.permute.xlu0 %624 }
 0x140   : > { %2382 = vmatmul.mubr.msk.bf16.gmra.mrb[4].mxu1 %vm464_vm0, %v3138_v50 }
 0x141   : > { %772 = vmatprep.mubr.bf16.mxu1 %v3839_v0  ;;  %1081 = vmatpush1.bf16.msra.mxu1 %v1068_v52 }
 0x142   : > { %1082 = vmatprep.subr.bf16.mxu1 %v1071_v53 }
 0x145   : > { %1083 = vmatpush1.bf16.msra.mxu1 %v1070_v5 }
 0x146   : > { %1084 = vmatprep.subr.bf16.mxu1 %v1073_v6 }
 0x148   : > { %2383 = vmatmul.mubr.msk.bf16.gmra.mrb[8].mxu1 %vm464_vm0, %v3154_v16 }
 0x149   : > { %782 = vmatprep.mubr.bf16.mxu1 %v3839_v0  ;;  %1085 = vmatpush1.bf16.msra.mxu1 %v1072_v17 }
 0x14a   : > { %1086 = vmatprep.subr.bf16.mxu1 %v1075_v18 }
 0x14d   : > { %1087 = vmatpush1.bf16.msra.mxu1 %v1074_v23 }
 0x14e   : > { %2565 = vmatprep.subr.bf16.mxu1 %v3018_v34 }
 0x150   : > { %2384 = vmatmul.mubr.msk.bf16.gmra.mrb[12].mxu1 %vm464_vm0, %v3164_v26 }
 0x151   : > { %792 = vmatprep.mubr.bf16.mxu1 %v3839_v0 }
 0x158   : > { %2385 = vmatmul.mubr.msk.bf16.gmra.mrb[16].mxu1 %vm464_vm0, %v3173_v27 }
 0x159   : > { %802 = vmatprep.mubr.bf16.mxu1 %v3839_v0 }
 0x160   : > { %2386 = vmatmul.mubr.msk.bf16.gmra.mrb[20].mxu1 %vm464_vm0, %v3181_v29 }
 0x161   : > { %1108 = vmatprep.mubr.bf16.mxu1 %v3839_v0 }
 0x168   : > { %2427 = vmatmul.mubr.msk.bf16.vlgmr.msra.gmra.mrb[24].mxu1 %vm464_vm0, %v2925_v51  ;;  %v3214_v51 = vld [vmem:[%s3837_s5 + $0x28] sm:$0xff]  }
 0x169   : > { %1118 = vmatprep.mubr.bf16.mxu1 %v3839_v0  ;;  %2566 = vmatpush3.bf16.msra.mxu1 %v3023_v35 }
 0x16a   : > { %2567 = vmatprep.subr.bf16.mxu1 %v3028_v36  ;;  %2524 = vmatpush3.bf16.msra.mxu0 %v3214_v51 }
 0x16d   : > { %2568 = vmatpush3.bf16.msra.mxu1 %v3038_v43 }
 0x16e   : > { %2569 = vmatprep.subr.bf16.mxu1 %v3047_v47 }
 0x170   : > { %2428 = vmatmul.mubr.msk.bf16.gmra.mrb[28].mxu1 %vm464_vm0, %v2945_v56  ;;  %v3221_v56 = vld [vmem:[%s3837_s5 + $0x70] sm:$0xff]  }
 0x171   : > { %1128 = vmatprep.mubr.bf16.mxu1 %v3839_v0  ;;  %2570 = vmatpush3.bf16.msra.mxu1 %v3055_v54 }
 0x172   : > { %2571 = vmatprep.subr.bf16.mxu1 %v3061_v58  ;;  %2525 = vmatprep.subr.bf16.mxu0 %v3221_v56 }
 0x175   : > { %2572 = vmatpush3.bf16.msra.mxu1 %v3070_v7 }
 0x176   : > { %2573 = vmatprep.subr.bf16.mxu1 %v3079_v12 }
 0x178   : > { %2429 = vmatmul.mubr.msk.bf16.gmra.mrb[32].mxu1 %vm464_vm0, %v2965_v61  ;;  %v3226_v61 = vld [vmem:[%s3837_s5 + $0x30] sm:$0xff]  }
 0x179   : > { %1138 = vmatprep.mubr.bf16.mxu1 %v3839_v0  ;;  %2574 = vmatpush3.bf16.msra.mxu1 %v3087_v19 }
 0x17a   : > { %2575 = vmatprep.subr.bf16.mxu1 %v3093_v22  ;;  %2526 = vmatpush3.bf16.msra.mxu0 %v3226_v61 }
 0x17d   : > { %2576 = vmatpush3.bf16.msra.mxu1 %v3214_v51 }
 0x17e   : > { %2577 = vmatprep.subr.bf16.mxu1 %v3221_v56 }
 0x180   : > { %2430 = vmatmul.mubr.msk.bf16.gmra.mrb[36].mxu1 %vm464_vm0, %v2979_v1  ;;  %v3237_v1 = vld [vmem:[%s3837_s5 + $0x78] sm:$0xff]  }
 0x181   : > { %1148 = vmatprep.mubr.bf16.mxu1 %v3839_v0  ;;  %2578 = vmatpush3.bf16.msra.mxu1 %v3226_v61 }
 0x182   : > { %2527 = vmatprep.subr.bf16.mxu0 %v3237_v1  ;;  %2579 = vmatprep.subr.bf16.mxu1 %v3237_v1 }
 0x188   : > { %2431 = vmatmul.mubr.msk.bf16.gmra.mrb[40].mxu1 %vm464_vm0, %v2987_v2  ;;  %v3242_v2 = vld [vmem:[%s3837_s5 + $0x38] sm:$0xff]  }
 0x189   : > { %1158 = vmatprep.mubr.bf16.mxu1 %v3839_v0  ;;  %2528 = vmatpush3.bf16.msra.mxu0 %v3242_v2 }
 0x18a   : > { %2580 = vmatpush3.bf16.msra.mxu1 %v3242_v2 }
 0x190   : > { %2432 = vmatmul.mubr.msk.bf16.gmra.mrb[44].mxu1 %vm464_vm0, %v2995_v3 }
 0x20b   : > { %v754_v3 = vpop.f32.mrb[0].mxu1 }
 0x20c   : > { %v755_v32 = vadd.f32 %v754_v3, %v3248_v31  ;;  %v756_v33 = vpop.f32.mrb[1].mxu1 }
 0x20d   : > { %v757_v39 = vadd.f32 %v756_v33, %v3248_v31  ;;  %v758_v40 = vpop.f32.mrb[2].mxu1  ;;  %v3264_v33 = vpop.permute.xlu0 %634 }
 0x20e   : > { %v759_v41 = vadd.f32 %v758_v40, %v3251_v37  ;;  %v760_v42 = vpop.f32.mrb[3].mxu1  ;;  %v813_v46 = vmax.f32 %v755_v32, 0.0 }
 0x20f   : > { %v761_v45 = vadd.f32 %v760_v42, %v3251_v37  ;;  %v814_v52 = vmax.f32 %v757_v39, 0.0 }
 0x210   : > { %v815_v49 = vmax.f32 %v759_v41, 0.0 }
 0x211   : > { %v816_v53 = vmax.f32 %v761_v45, 0.0  ;;  %v3267_v45 = vpop.permute.xlu1 %639 }
 0x212   : > { %v837_v57 = vpack.c.bf16 %v815_v49, %v813_v46 }
 0x213   : > { %v838_v62 = vpack.c.bf16 %v816_v53, %v814_v52  ;;  %v764_v63 = vpop.f32.mrb[4].mxu1 }
 0x214   : > { %v765_v5 = vadd.f32 %v764_v63, %v3256_v59  ;;  %v766_v6 = vpop.f32.mrb[5].mxu1 }
 0x215   : > { %v767_v11 = vadd.f32 %v766_v6, %v3256_v59  ;;  %v768_v14 = vpop.f32.mrb[6].mxu1  ;;  %977 = vmatprep.mubr.bf16.mxu0 %v838_v62 }
 0x216   : > { %v769_v15 = vadd.f32 %v768_v14, %v3259_v10  ;;  %v770_v17 = vpop.f32.mrb[7].mxu1  ;;  %978 = vmatmul.mubr.bf16.vlgmr.msra.gmra.mrb[24].mxu0 %v837_v57  ;;  %v817_v20 = vmax.f32 %v765_v5, 0.0  ;;  %v3272_v14 = vpop.permute.xlu0 %644 }
 0x217   : > { %v771_v18 = vadd.f32 %v770_v17, %v3259_v10  ;;  %v818_v23 = vmax.f32 %v767_v11, 0.0 }
 0x218   : > { %v819_v21 = vmax.f32 %v769_v15, 0.0 }
 0x219   : > { %v820_v3 = vmax.f32 %v771_v18, 0.0 }
 0x21a   : > { %v839_v32 = vpack.c.bf16 %v819_v21, %v817_v20  ;;  %v3275_v21 = vpop.permute.xlu1 %649 }
 0x21b   : > { %v840_v39 = vpack.c.bf16 %v820_v3, %v818_v23  ;;  %v774_v40 = vpop.f32.mrb[8].mxu1 }
 0x21c   : > { %v775_v41 = vadd.f32 %v774_v40, %v3264_v33  ;;  %v776_v42 = vpop.f32.mrb[9].mxu1 }
 0x21d   : > { %v777_v46 = vadd.f32 %v776_v42, %v3264_v33  ;;  %v778_v49 = vpop.f32.mrb[10].mxu1  ;;  %985 = vmatprep.mubr.bf16.mxu0 %v840_v39 }
 0x21e   : > { %v779_v52 = vadd.f32 %v778_v49, %v3267_v45  ;;  %v780_v53 = vpop.f32.mrb[11].mxu1  ;;  %986 = vmatmul.mubr.bf16.gmra.mrb[28].mxu0 %v839_v32  ;;  %v821_v62 = vmax.f32 %v775_v41, 0.0 }
 0x21f   : > { %v781_v57 = vadd.f32 %v780_v53, %v3267_v45  ;;  %v822_v5 = vmax.f32 %v777_v46, 0.0  ;;  %v3280_v53 = vpop.permute.xlu0 %654 }
 0x220   : > { %v823_v63 = vmax.f32 %v779_v52, 0.0 }
 0x221   : > { %v824_v6 = vmax.f32 %v781_v57, 0.0 }
 0x222   : > { %v841_v11 = vpack.c.bf16 %v823_v63, %v821_v62 }
 0x223   : > { %v842_v15 = vpack.c.bf16 %v824_v6, %v822_v5  ;;  %v784_v17 = vpop.f32.mrb[12].mxu1  ;;  %v3283_v6 = vpop.permute.xlu1 %659 }
 0x224   : > { %v785_v18 = vadd.f32 %v784_v17, %v3272_v14  ;;  %v786_v20 = vpop.f32.mrb[13].mxu1 }
 0x225   : > { %v787_v23 = vadd.f32 %v786_v20, %v3272_v14  ;;  %v788_v3 = vpop.f32.mrb[14].mxu1  ;;  %993 = vmatprep.mubr.bf16.mxu0 %v842_v15 }
 0x226   : > { %v789_v32 = vadd.f32 %v788_v3, %v3275_v21  ;;  %v790_v39 = vpop.f32.mrb[15].mxu1  ;;  %994 = vmatmul.mubr.bf16.gmra.mrb[32].mxu0 %v841_v11  ;;  %v825_v41 = vmax.f32 %v785_v18, 0.0 }
 0x227   : > { %v791_v40 = vadd.f32 %v790_v39, %v3275_v21  ;;  %v826_v46 = vmax.f32 %v787_v23, 0.0 }
 0x228   : > { %v827_v42 = vmax.f32 %v789_v32, 0.0 }
 0x229   : > { %v828_v49 = vmax.f32 %v791_v40, 0.0 }
 0x22a   : > { %v843_v52 = vpack.c.bf16 %v827_v42, %v825_v41  ;;  %v3288_v41 = vpop.permute.xlu0 %664 }
 0x22b   : > { %v844_v57 = vpack.c.bf16 %v828_v49, %v826_v46  ;;  %v794_v62 = vpop.f32.mrb[16].mxu1 }
 0x22c   : > { %v795_v63 = vadd.f32 %v794_v62, %v3280_v53  ;;  %v796_v5 = vpop.f32.mrb[17].mxu1 }
 0x22d   : > { %v797_v15 = vadd.f32 %v796_v5, %v3280_v53  ;;  %v798_v17 = vpop.f32.mrb[18].mxu1  ;;  %1001 = vmatprep.mubr.bf16.mxu0 %v844_v57  ;;  %v3291_v5 = vpop.permute.xlu1 %669 }
 0x22e   : > { %v799_v11 = vadd.f32 %v798_v17, %v3283_v6  ;;  %v800_v18 = vpop.f32.mrb[19].mxu1  ;;  %1002 = vmatmul.mubr.bf16.gmra.mrb[36].mxu0 %v843_v52  ;;  %v829_v23 = vmax.f32 %v795_v63, 0.0 }
 0x22f   : > { %v801_v20 = vadd.f32 %v800_v18, %v3283_v6  ;;  %v830_v32 = vmax.f32 %v797_v15, 0.0 }
 0x230   : > { %v831_v3 = vmax.f32 %v799_v11, 0.0 }
 0x231   : > { %v832_v39 = vmax.f32 %v801_v20, 0.0 }
 0x232   : > { %v845_v40 = vpack.c.bf16 %v831_v3, %v829_v23 }
 0x233   : > { %v846_v42 = vpack.c.bf16 %v832_v39, %v830_v32  ;;  %v804_v46 = vpop.f32.mrb[20].mxu1 }
 0x234   : > { %v805_v49 = vadd.f32 %v804_v46, %v3288_v41  ;;  %v806_v62 = vpop.f32.mrb[21].mxu1 }
 0x235   : > { %v807_v57 = vadd.f32 %v806_v62, %v3288_v41  ;;  %v808_v17 = vpop.f32.mrb[22].mxu1  ;;  %1009 = vmatprep.mubr.bf16.mxu0 %v846_v42 }
 0x236   : > { %v809_v52 = vadd.f32 %v808_v17, %v3291_v5  ;;  %v810_v63 = vpop.f32.mrb[23].mxu1  ;;  %1010 = vmatmul.mubr.bf16.gmra.mrb[40].mxu0 %v845_v40  ;;  %v833_v11 = vmax.f32 %v805_v49, 0.0  ;;  %v3847_v49 = vmov 0  }
 0x237   : > { %v811_v15 = vadd.f32 %v810_v63, %v3291_v5  ;;  %v834_v20 = vmax.f32 %v807_v57, 0.0 }
 0x238   : > { %v835_v18 = vmax.f32 %v809_v52, 0.0 }
 0x239   : > { %v836_v23 = vmax.f32 %v811_v15, 0.0 }
 0x23a   : > { %v847_v3 = vpack.c.bf16 %v835_v18, %v833_v11 }
 0x23b   : > { %v848_v32 = vpack.c.bf16 %v836_v23, %v834_v20  ;;  %v1110_v39 = vpop.f32.mrb[24].mxu1 }
 0x23c   : > { %v1111_v46 = vadd.f32 %v1110_v39, %v2999_v4  ;;  %v1112_v0 = vpop.f32.mrb[25].mxu1 }
 0x23d   : > { %v1113_v62 = vadd.f32 %v1112_v0, %v2999_v4  ;;  %1017 = vmatprep.mubr.bf16.mxu0 %v848_v32  ;;  %v1114_v42 = vpop.f32.mrb[26].mxu1 }
 0x23e   : > { %v1115_v17 = vadd.f32 %v1114_v42, %v3002_v8  ;;  %1018 = vmatmul.mubr.bf16.gmra.mrb[44].mxu0 %v847_v3  ;;  %v1116_v40 = vpop.f32.mrb[27].mxu1  ;;  %v1169_v57 = vmax.f32 %v1111_v46, 0.0 }
 0x23f   : > { %v1117_v63 = vadd.f32 %v1116_v40, %v3002_v8  ;;  %1237 = vmatprep.mubr.bf16.mxu0 %v3847_v49  ;;  %v1170_v15 = vmax.f32 %v1113_v62, 0.0 }
 0x240   : > { %v1171_v52 = vmax.f32 %v1115_v17, 0.0 }
 0x241   : > { %v1172_v11 = vmax.f32 %v1117_v63, 0.0 }
 0x242   : > { %v1193_v18 = vpack.c.bf16 %v1171_v52, %v1169_v57 }
 0x243   : > { %v1194_v20 = vpack.c.bf16 %v1172_v11, %v1170_v15  ;;  %v1120_v23 = vpop.f32.mrb[28].mxu1 }
 0x244   : > { %v1121_v39 = vadd.f32 %v1120_v23, %v3006_v13  ;;  %v1122_v0 = vpop.f32.mrb[29].mxu1 }
 0x245   : > { %v1123_v32 = vadd.f32 %v1122_v0, %v3006_v13  ;;  %v1124_v4 = vpop.f32.mrb[30].mxu1  ;;  %1205 = vmatprep.subr.bf16.mxu0 %v1194_v20 }
 0x246   : > { %v1125_v3 = vadd.f32 %v1124_v4, %v3010_v24  ;;  %v1126_v42 = vpop.f32.mrb[31].mxu1  ;;  %1206 = vmatpush1.bf16.msra.mxu0 %v1193_v18  ;;  %v1173_v46 = vmax.f32 %v1121_v39, 0.0 }
 0x247   : > { %v1127_v40 = vadd.f32 %v1126_v42, %v3010_v24  ;;  %v1174_v62 = vmax.f32 %v1123_v32, 0.0 }
 0x248   : > { %v1175_v17 = vmax.f32 %v1125_v3, 0.0 }
 0x249   : > { %v1176_v63 = vmax.f32 %v1127_v40, 0.0 }
 0x24a   : > { %v1195_v57 = vpack.c.bf16 %v1175_v17, %v1173_v46 }
 0x24b   : > { %v1196_v52 = vpack.c.bf16 %v1176_v63, %v1174_v62  ;;  %v1130_v15 = vpop.f32.mrb[32].mxu1 }
 0x24c   : > { %v1131_v11 = vadd.f32 %v1130_v15, %v3030_v38  ;;  %v1132_v23 = vpop.f32.mrb[33].mxu1 }
 0x24d   : > { %v1133_v0 = vadd.f32 %v1132_v23, %v3030_v38  ;;  %v1134_v13 = vpop.f32.mrb[34].mxu1  ;;  %1207 = vmatprep.subr.bf16.mxu0 %v1196_v52 }
 0x24e   : > { %v1135_v4 = vadd.f32 %v1134_v13, %v3040_v44  ;;  %v1136_v20 = vpop.f32.mrb[35].mxu1  ;;  %1208 = vmatpush1.bf16.msra.mxu0 %v1195_v57  ;;  %v1177_v39 = vmax.f32 %v1131_v11, 0.0 }
 0x24f   : > { %v1137_v18 = vadd.f32 %v1136_v20, %v3040_v44  ;;  %v1178_v32 = vmax.f32 %v1133_v0, 0.0 }
 0x250   : > { %v1179_v3 = vmax.f32 %v1135_v4, 0.0 }
 0x251   : > { %v1180_v42 = vmax.f32 %v1137_v18, 0.0 }
 0x252   : > { %v1197_v40 = vpack.c.bf16 %v1179_v3, %v1177_v39 }
 0x253   : > { %v1198_v46 = vpack.c.bf16 %v1180_v42, %v1178_v32  ;;  %v1140_v17 = vpop.f32.mrb[36].mxu1 }
 0x254   : > { %v1141_v62 = vadd.f32 %v1140_v17, %v3063_v60  ;;  %v1142_v63 = vpop.f32.mrb[37].mxu1 }
 0x255   : > { %v1143_v15 = vadd.f32 %v1142_v63, %v3063_v60  ;;  %v1144_v23 = vpop.f32.mrb[38].mxu1  ;;  %1209 = vmatprep.subr.bf16.mxu0 %v1198_v46 }
 0x256   : > { %v1145_v13 = vadd.f32 %v1144_v23, %v3072_v9  ;;  %v1146_v52 = vpop.f32.mrb[39].mxu1  ;;  %1210 = vmatpush1.bf16.msra.mxu0 %v1197_v40  ;;  %v1181_v11 = vmax.f32 %v1141_v62, 0.0 }
 0x257   : > { %v1147_v57 = vadd.f32 %v1146_v52, %v3072_v9  ;;  %v1182_v0 = vmax.f32 %v1143_v15, 0.0 }
 0x258   : > { %v1183_v4 = vmax.f32 %v1145_v13, 0.0 }
 0x259   : > { %v1184_v20 = vmax.f32 %v1147_v57, 0.0 }
 0x25a   : > { %v1199_v18 = vpack.c.bf16 %v1183_v4, %v1181_v11 }
 0x25b   : > { %v1200_v39 = vpack.c.bf16 %v1184_v20, %v1182_v0  ;;  %v1150_v3 = vpop.f32.mrb[40].mxu1 }
 0x25c   : > { %v1151_v32 = vadd.f32 %v1150_v3, %v3095_v25  ;;  %v1152_v42 = vpop.f32.mrb[41].mxu1 }
 0x25d   : > { %v1153_v17 = vadd.f32 %v1152_v42, %v3095_v25  ;;  %v1154_v63 = vpop.f32.mrb[42].mxu1  ;;  %1211 = vmatprep.subr.bf16.mxu0 %v1200_v39 }
 0x25e   : > { %v1155_v46 = vadd.f32 %v1154_v63, %v3099_v30  ;;  %v1156_v23 = vpop.f32.mrb[43].mxu1  ;;  %1212 = vmatpush1.bf16.msra.mxu0 %v1199_v18  ;;  %v1185_v62 = vmax.f32 %v1151_v32, 0.0 }
 0x25f   : > { %v1157_v40 = vadd.f32 %v1156_v23, %v3099_v30  ;;  %v1186_v15 = vmax.f32 %v1153_v17, 0.0  ;;  %v2442_v23 = vld [vmem:[%s2860_s7 + $0x198] sm:$0xff] }
 0x260   : > { %v1187_v13 = vmax.f32 %v1155_v46, 0.0  ;;  %v2440_v46 = vld [vmem:[%s2860_s7 + $0x188] sm:$0xff] }
 0x261   : > { %v1188_v52 = vmax.f32 %v1157_v40, 0.0 }
 0x262   : > { %v1201_v57 = vpack.c.bf16 %v1187_v13, %v1185_v62 }
 0x263   : > { %v1202_v11 = vpack.c.bf16 %v1188_v52, %v1186_v15  ;;  %v1160_v4 = vpop.f32.mrb[44].mxu1  ;;  %v1502_v52 = vpack.c.bf16 %v2442_v23, %v2440_v46  ;;  %v2447_v46 = vld [vmem:[%s2860_s7 + $0x1c0] sm:$0xff]  ;;  %v2449_v23 = vld [vmem:[%s2860_s7 + $0x1d0] sm:$0xff] }
 0x264   : > { %v1161_v0 = vadd.f32 %v1160_v4, %v3105_v48  ;;  %v1162_v20 = vpop.f32.mrb[45].mxu1  ;;  %v2441_v4 = vld [vmem:[%s2860_s7 + $0x190] sm:$0xff] }
 0x265   : > { %v1163_v39 = vadd.f32 %v1162_v20, %v3105_v48  ;;  %v1164_v3 = vpop.f32.mrb[46].mxu1  ;;  %1213 = vmatprep.subr.bf16.mxu0 %v1202_v11  ;;  %v2439_v11 = vld [vmem:[%s2860_s7 + $0x180] sm:$0xff]  ;;  %v2444_v20 = vld [vmem:[%s2860_s7 + $0x1a8] sm:$0xff] }
 0x266   : > { %v1165_v18 = vadd.f32 %v1164_v3, %v3108_v55  ;;  %v1166_v32 = vpop.f32.mrb[47].mxu1  ;;  %1214 = vmatpush1.bf16.msra.mxu0 %v1201_v57  ;;  %v1189_v17 = vmax.f32 %v1161_v0, 0.0  ;;  %v2446_v3 = vld [vmem:[%s2860_s7 + $0x1b8] sm:$0xff]  ;;  %v1501_v57 = vpack.c.bf16 %v2441_v4, %v2439_v11  ;;  %v2456_v11 = vld [vmem:[%s2860_s7 + $0x208] sm:$0xff] }
 0x267   : > { %v1167_v42 = vadd.f32 %v1166_v32, %v3108_v55  ;;  %v1190_v40 = vmax.f32 %v1163_v39, 0.0  ;;  %v1504_v0 = vpack.c.bf16 %v2446_v3, %v2444_v20  ;;  %v2443_v39 = vld [vmem:[%s2860_s7 + $0x1a0] sm:$0xff]  ;;  %v2448_v32 = vld [vmem:[%s2860_s7 + $0x1c8] sm:$0xff]  ;;  %v2458_v4 = vld [vmem:[%s2860_s7 + $0x218] sm:$0xff] }
 0x268   : > { %v1191_v63 = vmax.f32 %v1165_v18, 0.0  ;;  %v2445_v18 = vld [vmem:[%s2860_s7 + $0x1b0] sm:$0xff]  ;;  %v1510_v3 = vpack.c.bf16 %v2458_v4, %v2456_v11 }
 0x269   : > { %v1192_v62 = vmax.f32 %v1167_v42, 0.0  ;;  %v2450_v42 = vld [vmem:[%s2860_s7 + $0x1d8] sm:$0xff] }
 0x26a   : > { %v1203_v13 = vpack.c.bf16 %v1191_v63, %v1189_v17  ;;  %v1503_v17 = vpack.c.bf16 %v2445_v18, %v2443_v39  ;;  %v1506_v63 = vpack.c.bf16 %v2450_v42, %v2448_v32  ;;  %v2460_v39 = vld [vmem:[%s2860_s7 + $0x228] sm:$0xff]  ;;  %v2462_v18 = vld [vmem:[%s2860_s7 + $0x238] sm:$0xff] }
 0x26b   : > { %v1204_v15 = vpack.c.bf16 %v1192_v62, %v1190_v40  ;;  %v2452_v40 = vld [vmem:[%s2860_s7 + $0x1e8] sm:$0xff]  ;;  %v2454_v62 = vld [vmem:[%s2860_s7 + $0x1f8] sm:$0xff]  ;;  %v1512_v42 = vpack.c.bf16 %v2462_v18, %v2460_v39 }
 0x26d   : > { %1215 = vmatprep.subr.bf16.mxu0 %v1204_v15  ;;  %v2451_v15 = vld [vmem:[%s2860_s7 + $0x1e0] sm:$0xff] }
 0x26e   : > { %1216 = vmatpush1.bf16.msra.mxu0 %v1203_v13  ;;  %v1505_v13 = vpack.c.bf16 %v2449_v23, %v2447_v46 }
 0x26f   : > { %1513 = vmatprep.subr.bf16.mxu0 %v1502_v52  ;;  %v2453_v52 = vld [vmem:[%s2860_s7 + $0x1f0] sm:$0xff] }
 0x270   : > { %v1507_v20 = vpack.c.bf16 %v2453_v52, %v2451_v15 }
 0x271   : > { %2433 = vmatmul.mubr.msk.bf16.vlgmr.msra.gmra.mrb[48].mxu0 %vm464_vm0, %v3122_v28  ;;  %v1508_v28 = vpack.c.bf16 %v2454_v62, %v2452_v40 }
 0x272   : > { %1514 = vmatpush1.bf16.msra.mxu0 %v1501_v57  ;;  %1247 = vmatprep.mubr.bf16.mxu0 %v3847_v49  ;;  %v2455_v57 = vld [vmem:[%s2860_s7 + $0x200] sm:$0xff] }
 0x273   : > { %1515 = vmatprep.subr.bf16.mxu0 %v1504_v0  ;;  %v2457_v0 = vld [vmem:[%s2860_s7 + $0x210] sm:$0xff] }
 0x274   : > { %v1509_v32 = vpack.c.bf16 %v2457_v0, %v2455_v57 }
 0x276   : > { %1516 = vmatpush1.bf16.msra.mxu0 %v1503_v17  ;;  %v2459_v17 = vld [vmem:[%s2860_s7 + $0x220] sm:$0xff] }
 0x277   : > { %1517 = vmatprep.subr.bf16.mxu0 %v1506_v63  ;;  %v2461_v63 = vld [vmem:[%s2860_s7 + $0x230] sm:$0xff] }
 0x279   : > { %2434 = vmatmul.mubr.msk.bf16.gmra.mrb[52].mxu0 %vm464_vm0, %v3138_v50  ;;  %v1511_v50 = vpack.c.bf16 %v2461_v63, %v2459_v17 }
 0x27a   : > { %1257 = vmatprep.mubr.bf16.mxu0 %v3847_v49  ;;  %1518 = vmatpush1.bf16.msra.mxu0 %v1505_v13 }
 0x27b   : > { %1519 = vmatprep.subr.bf16.mxu0 %v1508_v28 }
 0x27e   : > { %1520 = vmatpush1.bf16.msra.mxu0 %v1507_v20 }
 0x27f   : > { %1521 = vmatprep.subr.bf16.mxu0 %v1510_v3 }
 0x281   : > { %2435 = vmatmul.mubr.msk.bf16.gmra.mrb[56].mxu0 %vm464_vm0, %v3154_v16  ;;  %v3367_v16 = vld [vmem:[%s3833_s1] sm:$0xff]  }
 0x282   : > { %1267 = vmatprep.mubr.bf16.mxu0 %v3847_v49  ;;  %1522 = vmatpush1.bf16.msra.mxu0 %v1509_v32 }
 0x283   : > { %1523 = vmatprep.subr.bf16.mxu0 %v1512_v42 }
 0x286   : > { %1524 = vmatpush1.bf16.msra.mxu0 %v1511_v50 }
 0x287   : > { %2617 = vmatprep.subr.bf16.mxu0 %v3018_v34  ;;  %v3379_v34 = vld [vmem:[%s3833_s1 + $0x8] sm:$0xff]  }
 0x289   : > { %2436 = vmatmul.mubr.msk.bf16.gmra.mrb[60].mxu0 %vm464_vm0, %v3164_v26 }
 0x28a   : > { %1277 = vmatprep.mubr.bf16.mxu0 %v3847_v49 }
 0x291   : > { %2437 = vmatmul.mubr.msk.bf16.gmra.mrb[64].mxu0 %vm464_vm0, %v3173_v27 }
 0x292   : > { %1287 = vmatprep.mubr.bf16.mxu0 %v3847_v49 }
 0x299   : > { %2438 = vmatmul.mubr.msk.bf16.gmra.mrb[68].mxu0 %vm464_vm0, %v3181_v29 }
 0x29a   : > { %1545 = vmatprep.mubr.bf16.mxu0 %v3847_v49 }
 0x2a1   : > { %2463 = vmatmul.mubr.msk.bf16.vlgmr.msra.gmra.mrb[72].mxu0 %vm464_vm0, %v3367_v16 }
 0x2a2   : > { %1555 = vmatprep.mubr.bf16.mxu0 %v3847_v49  ;;  %2618 = vmatpush3.bf16.msra.mxu0 %v3023_v35  ;;  %v3391_v35 = vld [vmem:[%s3833_s1 + $0x10] sm:$0xff]  }
 0x2a3   : > { %2619 = vmatprep.subr.bf16.mxu0 %v3028_v36  ;;  %v3403_v36 = vld [vmem:[%s3833_s1 + $0x18] sm:$0xff]  }
 0x2a6   : > { %2620 = vmatpush3.bf16.msra.mxu0 %v3038_v43  ;;  %v3414_v43 = vld [vmem:[%s3833_s1 + $0x20] sm:$0xff]  }
 0x2a7   : > { %2621 = vmatprep.subr.bf16.mxu0 %v3047_v47  ;;  %v3422_v47 = vld [vmem:[%s3833_s1 + $0x28] sm:$0xff]  }
 0x2a9   : > { %2464 = vmatmul.mubr.msk.bf16.gmra.mrb[76].mxu0 %vm464_vm0, %v3379_v34 }
 0x2aa   : > { %1565 = vmatprep.mubr.bf16.mxu0 %v3847_v49  ;;  %2622 = vmatpush3.bf16.msra.mxu0 %v3055_v54 }
 0x2ab   : > { %2623 = vmatprep.subr.bf16.mxu0 %v3061_v58 }
 0x2ae   : > { %2624 = vmatpush3.bf16.msra.mxu0 %v3070_v7 }
 0x2af   : > { %2625 = vmatprep.subr.bf16.mxu0 %v3079_v12 }
 0x2b1   : > { %2465 = vmatmul.mubr.msk.bf16.gmra.mrb[80].mxu0 %vm464_vm0, %v3391_v35 }
 0x2b2   : > { %1575 = vmatprep.mubr.bf16.mxu0 %v3847_v49  ;;  %2626 = vmatpush3.bf16.msra.mxu0 %v3087_v19 }
 0x2b3   : > { %2627 = vmatprep.subr.bf16.mxu0 %v3093_v22 }
 0x2b6   : > { %2628 = vmatpush3.bf16.msra.mxu0 %v3214_v51 }
 0x2b7   : > { %2629 = vmatprep.subr.bf16.mxu0 %v3221_v56 }
 0x2b9   : > { %2466 = vmatmul.mubr.msk.bf16.gmra.mrb[84].mxu0 %vm464_vm0, %v3403_v36 }
 0x2ba   : > { %1585 = vmatprep.mubr.bf16.mxu0 %v3847_v49  ;;  %2630 = vmatpush3.bf16.msra.mxu0 %v3226_v61 }
 0x2bb   : > { %2631 = vmatprep.subr.bf16.mxu0 %v3237_v1 }
 0x2be   : > { %2632 = vmatpush3.bf16.msra.mxu0 %v3242_v2 }
 0x2c1   : > { %2467 = vmatmul.mubr.msk.bf16.gmra.mrb[88].mxu0 %vm464_vm0, %v3414_v43 }
 0x2c2   : > { %1595 = vmatprep.mubr.bf16.mxu0 %v3847_v49 }
 0x2c9   : > { %2468 = vmatmul.mubr.msk.bf16.gmra.mrb[92].mxu0 %vm464_vm0, %v3422_v47 }
 0x2e9   : > { %v2529_v54 = vpop.f32.mrb[24].mxu0 }
 0x2ea   : > { %v2530_v58 = vpop.f32.mrb[25].mxu0 }
 0x2eb   : > { %v2531_v7 = vadd.f32 %v2530_v58, %v2529_v54  ;;  %v2532_v12 = vpop.f32.mrb[26].mxu0 }
 0x2ec   : > { %v2533_v19 = vpop.f32.mrb[27].mxu0 }
 0x2ed   : > { %1027 = vst.msk [vmem:[%s3431_s18] sm:$0xff] %vm1026_vm1, %v2531_v7  ;;  %v2534_v22 = vadd.f32 %v2533_v19, %v2532_v12 }
 0x2ef   : > { %1028 = vst.msk [vmem:[%s3431_s18 + $0x10] sm:$0xff] %vm1026_vm1, %v2534_v22 }
 0x2f1   : > { %v2535_v26 = vpop.f32.mrb[28].mxu0 }
 0x2f2   : > { %v2536_v27 = vpop.f32.mrb[29].mxu0 }
 0x2f3   : > { %v2537_v29 = vadd.f32 %v2536_v27, %v2535_v26  ;;  %v2538_v51 = vpop.f32.mrb[30].mxu0 }
 0x2f4   : > { %v2539_v56 = vpop.f32.mrb[31].mxu0 }
 0x2f5   : > { %1029 = vst.msk [vmem:[%s3431_s18 + $0x20] sm:$0xff] %vm1026_vm1, %v2537_v29  ;;  %v2540_v61 = vadd.f32 %v2539_v56, %v2538_v51 }
 0x2f7   : > { %1030 = vst.msk [vmem:[%s3431_s18 + $0x30] sm:$0xff] %vm1026_vm1, %v2540_v61 }
 0x2f9   : > { %v2541_v1 = vpop.f32.mrb[32].mxu0 }
 0x2fa   : > { %v2542_v2 = vpop.f32.mrb[33].mxu0 }
 0x2fb   : > { %v2543_v46 = vadd.f32 %v2542_v2, %v2541_v1  ;;  %v2544_v23 = vpop.f32.mrb[34].mxu0 }
 0x2fc   : > { %v2545_v40 = vpop.f32.mrb[35].mxu0 }
 0x2fd   : > { %1031 = vst.msk [vmem:[%s3431_s18 + $0x40] sm:$0xff] %vm1026_vm1, %v2543_v46  ;;  %v2546_v62 = vadd.f32 %v2545_v40, %v2544_v23 }
 0x2ff   : > { %1032 = vst.msk [vmem:[%s3431_s18 + $0x50] sm:$0xff] %vm1026_vm1, %v2546_v62 }
 0x301   : > { %v2547_v13 = vpop.f32.mrb[36].mxu0 }
 0x302   : > { %v2548_v28 = vpop.f32.mrb[37].mxu0 }
 0x303   : > { %v2549_v15 = vadd.f32 %v2548_v28, %v2547_v13  ;;  %v2550_v52 = vpop.f32.mrb[38].mxu0 }
 0x304   : > { %v2551_v11 = vpop.f32.mrb[39].mxu0 }
 0x305   : > { %1033 = vst.msk [vmem:[%s3431_s18 + $0x60] sm:$0xff] %vm1026_vm1, %v2549_v15  ;;  %v2552_v4 = vadd.f32 %v2551_v11, %v2550_v52 }
 0x307   : > { %1034 = vst.msk [vmem:[%s3431_s18 + $0x70] sm:$0xff] %vm1026_vm1, %v2552_v4 }
 0x309   : > { %v2553_v20 = vpop.f32.mrb[40].mxu0 }
 0x30a   : > { %v2554_v3 = vpop.f32.mrb[41].mxu0 }
 0x30b   : > { %v2555_v57 = vadd.f32 %v2554_v3, %v2553_v20  ;;  %v2556_v0 = vpop.f32.mrb[42].mxu0 }
 0x30c   : > { %v2557_v39 = vpop.f32.mrb[43].mxu0 }
 0x30d   : > { %1035 = vst.msk [vmem:[%s3431_s18 + $0x80] sm:$0xff] %vm1026_vm1, %v2555_v57  ;;  %v2558_v18 = vadd.f32 %v2557_v39, %v2556_v0 }
 0x30f   : > { %1036 = vst.msk [vmem:[%s3431_s18 + $0x90] sm:$0xff] %vm1026_vm1, %v2558_v18 }
 0x311   : > { %v2559_v32 = vpop.f32.mrb[44].mxu0 }
 0x312   : > { %v2560_v42 = vpop.f32.mrb[45].mxu0 }
 0x313   : > { %v2561_v17 = vadd.f32 %v2560_v42, %v2559_v32  ;;  %v2562_v63 = vpop.f32.mrb[46].mxu0 }
 0x314   : > { %v2563_v50 = vpop.f32.mrb[47].mxu0 }
 0x315   : > { %1037 = vst.msk [vmem:[%s3431_s18 + $0xa0] sm:$0xff] %vm1026_vm1, %v2561_v17  ;;  %v2564_v54 = vadd.f32 %v2563_v50, %v2562_v63 }
 0x317   : > { %1038 = vst.msk [vmem:[%s3431_s18 + $0xb0] sm:$0xff] %vm1026_vm1, %v2564_v54 }
 0x344   : > { %v1239_v58 = vpop.f32.mrb[48].mxu0 }
 0x345   : > { %v1240_v7 = vadd.f32 %v1239_v58, %v3248_v31  ;;  %v1241_v12 = vpop.f32.mrb[49].mxu0 }
 0x346   : > { %v1242_v19 = vadd.f32 %v1241_v12, %v3248_v31  ;;  %v1243_v22 = vpop.f32.mrb[50].mxu0 }
 0x347   : > { %v1244_v26 = vadd.f32 %v1243_v22, %v3251_v37  ;;  %v1245_v27 = vpop.f32.mrb[51].mxu0  ;;  %v1298_v51 = vmax.f32 %v1240_v7, 0.0 }
 0x348   : > { %v1246_v29 = vadd.f32 %v1245_v27, %v3251_v37  ;;  %v1299_v61 = vmax.f32 %v1242_v19, 0.0 }
 0x349   : > { %v1300_v56 = vmax.f32 %v1244_v26, 0.0 }
 0x34a   : > { %v1301_v1 = vmax.f32 %v1246_v29, 0.0 }
 0x34b   : > { %v1322_v2 = vpack.c.bf16 %v1300_v56, %v1298_v51 }
 0x34c   : > { %v1323_v46 = vpack.c.bf16 %v1301_v1, %v1299_v61  ;;  %v1249_v23 = vpop.f32.mrb[52].mxu0 }
 0x34d   : > { %v1250_v40 = vadd.f32 %v1249_v23, %v3256_v59  ;;  %v1251_v62 = vpop.f32.mrb[53].mxu0 }
 0x34e   : > { %v1252_v13 = vadd.f32 %v1251_v62, %v3256_v59  ;;  %v1253_v28 = vpop.f32.mrb[54].mxu0  ;;  %1366 = vmatprep.mubr.bf16.mxu1 %v1323_v46 }
 0x34f   : > { %v1254_v15 = vadd.f32 %v1253_v28, %v3259_v10  ;;  %v1255_v52 = vpop.f32.mrb[55].mxu0  ;;  %1367 = vmatmul.mubr.bf16.vlgmr.msra.gmra.mrb[48].mxu1 %v1322_v2  ;;  %v1302_v4 = vmax.f32 %v1250_v40, 0.0 }
 0x350   : > { %v1256_v11 = vadd.f32 %v1255_v52, %v3259_v10  ;;  %v1303_v3 = vmax.f32 %v1252_v13, 0.0 }
 0x351   : > { %v1304_v20 = vmax.f32 %v1254_v15, 0.0 }
 0x352   : > { %v1305_v57 = vmax.f32 %v1256_v11, 0.0 }
 0x353   : > { %v1324_v0 = vpack.c.bf16 %v1304_v20, %v1302_v4 }
 0x354   : > { %v1325_v39 = vpack.c.bf16 %v1305_v57, %v1303_v3  ;;  %v1259_v18 = vpop.f32.mrb[56].mxu0 }
 0x355   : > { %v1260_v32 = vadd.f32 %v1259_v18, %v3264_v33  ;;  %v1261_v42 = vpop.f32.mrb[57].mxu0 }
 0x356   : > { %v1262_v17 = vadd.f32 %v1261_v42, %v3264_v33  ;;  %v1263_v63 = vpop.f32.mrb[58].mxu0  ;;  %1374 = vmatprep.mubr.bf16.mxu1 %v1325_v39 }
 0x357   : > { %v1264_v50 = vadd.f32 %v1263_v63, %v3267_v45  ;;  %v1265_v54 = vpop.f32.mrb[59].mxu0  ;;  %1375 = vmatmul.mubr.bf16.gmra.mrb[52].mxu1 %v1324_v0  ;;  %v1306_v7 = vmax.f32 %v1260_v32, 0.0 }
 0x358   : > { %v1266_v58 = vadd.f32 %v1265_v54, %v3267_v45  ;;  %v1307_v19 = vmax.f32 %v1262_v17, 0.0 }
 0x359   : > { %v1308_v12 = vmax.f32 %v1264_v50, 0.0 }
 0x35a   : > { %v1309_v22 = vmax.f32 %v1266_v58, 0.0 }
 0x35b   : > { %v1326_v26 = vpack.c.bf16 %v1308_v12, %v1306_v7 }
 0x35c   : > { %v1327_v27 = vpack.c.bf16 %v1309_v22, %v1307_v19  ;;  %v1269_v29 = vpop.f32.mrb[60].mxu0 }
 0x35d   : > { %v1270_v51 = vadd.f32 %v1269_v29, %v3272_v14  ;;  %v1271_v56 = vpop.f32.mrb[61].mxu0 }
 0x35e   : > { %v1272_v61 = vadd.f32 %v1271_v56, %v3272_v14  ;;  %v1273_v1 = vpop.f32.mrb[62].mxu0  ;;  %1382 = vmatprep.mubr.bf16.mxu1 %v1327_v27 }
 0x35f   : > { %v1274_v2 = vadd.f32 %v1273_v1, %v3275_v21  ;;  %v1275_v46 = vpop.f32.mrb[63].mxu0  ;;  %1383 = vmatmul.mubr.bf16.gmra.mrb[56].mxu1 %v1326_v26  ;;  %v1310_v40 = vmax.f32 %v1270_v51, 0.0 }
 0x360   : > { %v1276_v23 = vadd.f32 %v1275_v46, %v3275_v21  ;;  %v1311_v13 = vmax.f32 %v1272_v61, 0.0 }
 0x361   : > { %v1312_v62 = vmax.f32 %v1274_v2, 0.0 }
 0x362   : > { %v1313_v28 = vmax.f32 %v1276_v23, 0.0 }
 0x363   : > { %v1328_v15 = vpack.c.bf16 %v1312_v62, %v1310_v40  ;;  %v3848_v40 = vld [vmem:[#allocation2_spill] sm:$0xff] }
 0x364   : > { %v1329_v52 = vpack.c.bf16 %v1313_v28, %v1311_v13  ;;  %v1279_v11 = vpop.f32.mrb[64].mxu0 }
 0x365   : > { %v1280_v4 = vadd.f32 %v1279_v11, %v3280_v53  ;;  %v1281_v20 = vpop.f32.mrb[65].mxu0 }
 0x366   : > { %v1282_v3 = vadd.f32 %v1281_v20, %v3280_v53  ;;  %v1283_v57 = vpop.f32.mrb[66].mxu0  ;;  %1390 = vmatprep.mubr.bf16.mxu1 %v1329_v52 }
 0x367   : > { %v1284_v0 = vadd.f32 %v1283_v57, %v3283_v6  ;;  %v1285_v39 = vpop.f32.mrb[67].mxu0  ;;  %1391 = vmatmul.mubr.bf16.gmra.mrb[60].mxu1 %v1328_v15  ;;  %v1314_v32 = vmax.f32 %v1280_v4, 0.0 }
 0x368   : > { %v1286_v18 = vadd.f32 %v1285_v39, %v3283_v6  ;;  %v1315_v17 = vmax.f32 %v1282_v3, 0.0 }
 0x369   : > { %v1316_v42 = vmax.f32 %v1284_v0, 0.0 }
 0x36a   : > { %v1317_v63 = vmax.f32 %v1286_v18, 0.0 }
 0x36b   : > { %v1330_v50 = vpack.c.bf16 %v1316_v42, %v1314_v32  ;;  %v3849_v42 = vld [vmem:[#allocation3_spill] sm:$0xff] }
 0x36c   : > { %v1331_v54 = vpack.c.bf16 %v1317_v63, %v1315_v17  ;;  %v1289_v58 = vpop.f32.mrb[68].mxu0 }
 0x36d   : > { %v1290_v7 = vadd.f32 %v1289_v58, %v3288_v41  ;;  %v1291_v12 = vpop.f32.mrb[69].mxu0 }
 0x36e   : > { %v1292_v19 = vadd.f32 %v1291_v12, %v3288_v41  ;;  %v1293_v22 = vpop.f32.mrb[70].mxu0  ;;  %1398 = vmatprep.mubr.bf16.mxu1 %v1331_v54 }
 0x36f   : > { %v1294_v26 = vadd.f32 %v1293_v22, %v3291_v5  ;;  %v1295_v27 = vpop.f32.mrb[71].mxu0  ;;  %1399 = vmatmul.mubr.bf16.gmra.mrb[64].mxu1 %v1330_v50  ;;  %v1318_v51 = vmax.f32 %v1290_v7, 0.0 }
 0x370   : > { %v1296_v29 = vadd.f32 %v1295_v27, %v3291_v5  ;;  %v1319_v61 = vmax.f32 %v1292_v19, 0.0 }
 0x371   : > { %v1320_v56 = vmax.f32 %v1294_v26, 0.0 }
 0x372   : > { %v1321_v1 = vmax.f32 %v1296_v29, 0.0 }
 0x373   : > { %v1332_v2 = vpack.c.bf16 %v1320_v56, %v1318_v51 }
 0x374   : > { %v1333_v46 = vpack.c.bf16 %v1321_v1, %v1319_v61  ;;  %v1547_v23 = vpop.f32.mrb[72].mxu0 }
 0x375   : > { %v1548_v62 = vadd.f32 %v1547_v23, %v3848_v40  ;;  %v1549_v13 = vpop.f32.mrb[73].mxu0 }
 0x376   : > { %v1550_v28 = vadd.f32 %v1549_v13, %v3848_v40  ;;  %1406 = vmatprep.mubr.bf16.mxu1 %v1333_v46  ;;  %v1551_v15 = vpop.f32.mrb[74].mxu0 }
 0x377   : > { %v1552_v52 = vadd.f32 %v1551_v15, %v3002_v8  ;;  %1407 = vmatmul.mubr.bf16.gmra.mrb[68].mxu1 %v1332_v2  ;;  %v1553_v11 = vpop.f32.mrb[75].mxu0  ;;  %v1606_v20 = vmax.f32 %v1548_v62, 0.0 }
 0x378   : > { %v1554_v4 = vadd.f32 %v1553_v11, %v3002_v8  ;;  %1674 = vmatprep.mubr.bf16.mxu1 %v3847_v49  ;;  %v1607_v57 = vmax.f32 %v1550_v28, 0.0 }
 0x379   : > { %v1608_v3 = vmax.f32 %v1552_v52, 0.0 }
 0x37a   : > { %v1609_v0 = vmax.f32 %v1554_v4, 0.0 }
 0x37b   : > { %v1630_v39 = vpack.c.bf16 %v1608_v3, %v1606_v20 }
 0x37c   : > { %v1631_v18 = vpack.c.bf16 %v1609_v0, %v1607_v57  ;;  %v1557_v32 = vpop.f32.mrb[76].mxu0 }
 0x37d   : > { %v1558_v17 = vadd.f32 %v1557_v32, %v3849_v42  ;;  %v1559_v63 = vpop.f32.mrb[77].mxu0 }
 0x37e   : > { %v1560_v50 = vadd.f32 %v1559_v63, %v3849_v42  ;;  %v1561_v54 = vpop.f32.mrb[78].mxu0  ;;  %1642 = vmatprep.subr.bf16.mxu1 %v1631_v18 }
 0x37f   : > { %v1562_v58 = vadd.f32 %v1561_v54, %v3010_v24  ;;  %v1563_v7 = vpop.f32.mrb[79].mxu0  ;;  %1643 = vmatpush1.bf16.msra.mxu1 %v1630_v39  ;;  %v1610_v19 = vmax.f32 %v1558_v17, 0.0 }
 0x380   : > { %v1564_v12 = vadd.f32 %v1563_v7, %v3010_v24  ;;  %v1611_v26 = vmax.f32 %v1560_v50, 0.0 }
 0x381   : > { %v1612_v22 = vmax.f32 %v1562_v58, 0.0 }
 0x382   : > { %v1613_v27 = vmax.f32 %v1564_v12, 0.0 }
 0x383   : > { %v1632_v29 = vpack.c.bf16 %v1612_v22, %v1610_v19 }
 0x384   : > { %v1633_v51 = vpack.c.bf16 %v1613_v27, %v1611_v26  ;;  %v1567_v56 = vpop.f32.mrb[80].mxu0 }
 0x385   : > { %v1568_v61 = vadd.f32 %v1567_v56, %v3030_v38  ;;  %v1569_v1 = vpop.f32.mrb[81].mxu0 }
 0x386   : > { %v1570_v2 = vadd.f32 %v1569_v1, %v3030_v38  ;;  %v1571_v46 = vpop.f32.mrb[82].mxu0  ;;  %1644 = vmatprep.subr.bf16.mxu1 %v1633_v51 }
 0x387   : > { %v1572_v23 = vadd.f32 %v1571_v46, %v3040_v44  ;;  %v1573_v62 = vpop.f32.mrb[83].mxu0  ;;  %1645 = vmatpush1.bf16.msra.mxu1 %v1632_v29  ;;  %v1614_v28 = vmax.f32 %v1568_v61, 0.0 }
 0x388   : > { %v1574_v13 = vadd.f32 %v1573_v62, %v3040_v44  ;;  %v1615_v52 = vmax.f32 %v1570_v2, 0.0 }
 0x389   : > { %v1616_v15 = vmax.f32 %v1572_v23, 0.0 }
 0x38a   : > { %v1617_v11 = vmax.f32 %v1574_v13, 0.0 }
 0x38b   : > { %v1634_v4 = vpack.c.bf16 %v1616_v15, %v1614_v28 }
 0x38c   : > { %v1635_v20 = vpack.c.bf16 %v1617_v11, %v1615_v52  ;;  %v1577_v3 = vpop.f32.mrb[84].mxu0 }
 0x38d   : > { %v1578_v57 = vadd.f32 %v1577_v3, %v3063_v60  ;;  %v1579_v0 = vpop.f32.mrb[85].mxu0 }
 0x38e   : > { %v1580_v39 = vadd.f32 %v1579_v0, %v3063_v60  ;;  %v1581_v18 = vpop.f32.mrb[86].mxu0  ;;  %1646 = vmatprep.subr.bf16.mxu1 %v1635_v20 }
 0x38f   : > { %v1582_v32 = vadd.f32 %v1581_v18, %v3072_v9  ;;  %v1583_v17 = vpop.f32.mrb[87].mxu0  ;;  %1647 = vmatpush1.bf16.msra.mxu1 %v1634_v4  ;;  %v1618_v50 = vmax.f32 %v1578_v57, 0.0 }
 0x390   : > { %v1584_v63 = vadd.f32 %v1583_v17, %v3072_v9  ;;  %v1619_v58 = vmax.f32 %v1580_v39, 0.0  ;;  %v2478_v17 = vld [vmem:[%s2860_s7 + $0x258] sm:$0xff] }
 0x391   : > { %v1620_v54 = vmax.f32 %v1582_v32, 0.0  ;;  %v2476_v32 = vld [vmem:[%s2860_s7 + $0x248] sm:$0xff] }
 0x392   : > { %v1621_v7 = vmax.f32 %v1584_v63, 0.0 }
 0x393   : > { %v1636_v12 = vpack.c.bf16 %v1620_v54, %v1618_v50 }
 0x394   : > { %v1637_v19 = vpack.c.bf16 %v1621_v7, %v1619_v58  ;;  %v1587_v22 = vpop.f32.mrb[88].mxu0  ;;  %v1890_v7 = vpack.c.bf16 %v2478_v17, %v2476_v32  ;;  %v2491_v32 = vld [vmem:[%s2860_s7 + $0x2c0] sm:$0xff]  ;;  %v2493_v17 = vld [vmem:[%s2860_s7 + $0x2d0] sm:$0xff] }
 0x395   : > { %v1588_v26 = vadd.f32 %v1587_v22, %v3095_v25  ;;  %v1589_v27 = vpop.f32.mrb[89].mxu0  ;;  %v2480_v22 = vld [vmem:[%s2860_s7 + $0x268] sm:$0xff] }
 0x396   : > { %v1590_v29 = vadd.f32 %v1589_v27, %v3095_v25  ;;  %v1591_v51 = vpop.f32.mrb[90].mxu0  ;;  %1648 = vmatprep.subr.bf16.mxu1 %v1637_v19  ;;  %v2477_v19 = vld [vmem:[%s2860_s7 + $0x250] sm:$0xff] }
 0x397   : > { %v1592_v56 = vadd.f32 %v1591_v51, %v3099_v30  ;;  %v1593_v61 = vpop.f32.mrb[91].mxu0  ;;  %1649 = vmatpush1.bf16.msra.mxu1 %v1636_v12  ;;  %v1622_v2 = vmax.f32 %v1588_v26, 0.0  ;;  %v2475_v12 = vld [vmem:[%s2860_s7 + $0x240] sm:$0xff]  ;;  %v2482_v26 = vld [vmem:[%s2860_s7 + $0x278] sm:$0xff] }
 0x398   : > { %v1594_v1 = vadd.f32 %v1593_v61, %v3099_v30  ;;  %v1623_v23 = vmax.f32 %v1590_v29, 0.0  ;;  %v1889_v27 = vpack.c.bf16 %v2477_v19, %v2475_v12  ;;  %v1892_v29 = vpack.c.bf16 %v2482_v26, %v2480_v22  ;;  %v2479_v51 = vld [vmem:[%s2860_s7 + $0x260] sm:$0xff]  ;;  %v2484_v61 = vld [vmem:[%s2860_s7 + $0x288] sm:$0xff]  ;;  %v2497_v12 = vld [vmem:[%s2860_s7 + $0x2f0] sm:$0xff] }
 0x399   : > { %v1624_v46 = vmax.f32 %v1592_v56, 0.0  ;;  %v2481_v56 = vld [vmem:[%s2860_s7 + $0x270] sm:$0xff]  ;;  %v2772_v26 = vld [vmem:[%s3837_s5 + $0x40] sm:$0xff]  }
 0x39a   : > { %v1625_v62 = vmax.f32 %v1594_v1, 0.0  ;;  %v2486_v1 = vld [vmem:[%s2860_s7 + $0x298] sm:$0xff]  ;;  %v3549_v19 = vld [vmem:[%s3835_s3 + $0x10] sm:$0xff]  }
 0x39b   : > { %v1638_v13 = vpack.c.bf16 %v1624_v46, %v1622_v2  ;;  %v3519_v2 = vld [vmem:[%s3835_s3] sm:$0xff]   ;;  %v1891_v46 = vpack.c.bf16 %v2481_v56, %v2479_v51  ;;  %v3576_v51 = vld [vmem:[%s3835_s3 + $0x28] sm:$0xff]  }
 0x39c   : > { %v1639_v28 = vpack.c.bf16 %v1625_v62, %v1623_v23  ;;  %v1597_v15 = vpop.f32.mrb[92].mxu0  ;;  %v1894_v23 = vpack.c.bf16 %v2486_v1, %v2484_v61  ;;  %v2483_v62 = vld [vmem:[%s2860_s7 + $0x280] sm:$0xff]  ;;  %v2777_v61 = vld [vmem:[%s3837_s5 + $0x48] sm:$0xff]  }
 0x39d   : > { %v1598_v52 = vadd.f32 %v1597_v15, %v3105_v48  ;;  %v1599_v11 = vpop.f32.mrb[93].mxu0  ;;  %v2490_v15 = vld [vmem:[%s2860_s7 + $0x2b8] sm:$0xff]  ;;  %v2776_v56 = vld [vmem:[%s3837_s5] sm:$0xff]   ;;  %v2778_v1 = vld [vmem:[%s3837_s5 + $0x8] sm:$0xff]  }
 0x39e   : > { %v1600_v4 = vadd.f32 %v1599_v11, %v3105_v48  ;;  %v1601_v20 = vpop.f32.mrb[94].mxu0  ;;  %1650 = vmatprep.subr.bf16.mxu1 %v1639_v28  ;;  %v2488_v28 = vld [vmem:[%s2860_s7 + $0x2a8] sm:$0xff] }
 0x39f   : > { %v1602_v3 = vadd.f32 %v1601_v20, %v3108_v55  ;;  %v1603_v57 = vpop.f32.mrb[95].mxu0  ;;  %1651 = vmatpush1.bf16.msra.mxu1 %v1638_v13  ;;  %v1626_v39 = vmax.f32 %v1598_v52, 0.0  ;;  %v2485_v13 = vld [vmem:[%s2860_s7 + $0x290] sm:$0xff]  ;;  %v1896_v11 = vpack.c.bf16 %v2490_v15, %v2488_v28  ;;  %v2785_v28 = vld [vmem:[%s3837_s5 + $0x68] sm:$0xff]  }
 0x3a0   : > { %v1604_v0 = vadd.f32 %v1603_v57, %v3108_v55  ;;  %v1627_v63 = vmax.f32 %v1600_v4, 0.0  ;;  %v1893_v52 = vpack.c.bf16 %v2485_v13, %v2483_v62  ;;  %v2487_v4 = vld [vmem:[%s2860_s7 + $0x2a0] sm:$0xff]  ;;  %v2489_v20 = vld [vmem:[%s2860_s7 + $0x2b0] sm:$0xff]  ;;  %v2494_v57 = vld [vmem:[%s2860_s7 + $0x2d8] sm:$0xff] }
 0x3a1   : > { %v1628_v18 = vmax.f32 %v1602_v3, 0.0  ;;  %v2492_v3 = vld [vmem:[%s2860_s7 + $0x2c8] sm:$0xff]  ;;  %v2782_v62 = vld [vmem:[%s3837_s5 + $0x18] sm:$0xff]   ;;  %v2784_v13 = vld [vmem:[%s3837_s5 + $0x20] sm:$0xff]  }
 0x3a2   : > { %v1629_v50 = vmax.f32 %v1604_v0, 0.0  ;;  %v3535_v0 = vld [vmem:[%s3835_s3 + $0x8] sm:$0xff]  }
 0x3a3   : > { %v1640_v54 = vpack.c.bf16 %v1628_v18, %v1626_v39  ;;  %v1895_v39 = vpack.c.bf16 %v2489_v20, %v2487_v4  ;;  %v1898_v18 = vpack.c.bf16 %v2494_v57, %v2492_v3  ;;  %v2786_v15 = vld [vmem:[%s3837_s5 + $0x28] sm:$0xff]   ;;  %v2790_v4 = vld [vmem:[%s3837_s5 + $0x38] sm:$0xff]  }
 0x3a4   : > { %v1641_v58 = vpack.c.bf16 %v1629_v50, %v1627_v63  ;;  %v2496_v63 = vld [vmem:[%s2860_s7 + $0x2e8] sm:$0xff]  ;;  %v2498_v50 = vld [vmem:[%s2860_s7 + $0x2f8] sm:$0xff] }
 0x3a6   : > { %1652 = vmatprep.subr.bf16.mxu1 %v1641_v58  ;;  %v1900_v58 = vpack.c.bf16 %v2498_v50, %v2496_v63 }
 0x3a7   : > { %1653 = vmatpush1.bf16.msra.mxu1 %v1640_v54  ;;  %v1897_v54 = vpack.c.bf16 %v2493_v17, %v2491_v32 }
 0x3a8   : > { %1901 = vmatprep.subr.bf16.mxu1 %v1890_v7  ;;  %v2495_v7 = vld [vmem:[%s2860_s7 + $0x2e0] sm:$0xff] }
 0x3a9   : > { %v1899_v22 = vpack.c.bf16 %v2497_v12, %v2495_v7 }
 0x3aa   : > { %2469 = vmatmul.mubr.msk.bf16.vlgmr.msra.gmra.mrb[72].mxu1 %vm464_vm0, %v3519_v2 }
 0x3ab   : > { %1902 = vmatpush1.bf16.msra.mxu1 %v1889_v27  ;;  %1684 = vmatprep.mubr.bf16.mxu1 %v3847_v49  ;;  %v3560_v27 = vld [vmem:[%s3835_s3 + $0x18] sm:$0xff]  }
 0x3ac   : > { %1903 = vmatprep.subr.bf16.mxu1 %v1892_v29  ;;  %v3568_v29 = vld [vmem:[%s3835_s3 + $0x20] sm:$0xff]  }
 0x3af   : > { %1904 = vmatpush1.bf16.msra.mxu1 %v1891_v46  ;;  %v2780_v46 = vld [vmem:[%s3837_s5 + $0x10] sm:$0xff]  }
 0x3b0   : > { %1905 = vmatprep.subr.bf16.mxu1 %v1894_v23  ;;  %v2781_v23 = vld [vmem:[%s3837_s5 + $0x58] sm:$0xff]  }
 0x3b2   : > { %2470 = vmatmul.mubr.msk.bf16.gmra.mrb[76].mxu1 %vm464_vm0, %v3535_v0 }
 0x3b3   : > { %1694 = vmatprep.mubr.bf16.mxu1 %v3847_v49  ;;  %1906 = vmatpush1.bf16.msra.mxu1 %v1893_v52  ;;  %v2788_v52 = vld [vmem:[%s3837_s5 + $0x30] sm:$0xff]  }
 0x3b4   : > { %1907 = vmatprep.subr.bf16.mxu1 %v1896_v11  ;;  %v2789_v11 = vld [vmem:[%s3837_s5 + $0x78] sm:$0xff]  }
 0x3b7   : > { %1908 = vmatpush1.bf16.msra.mxu1 %v1895_v39 }
 0x3b8   : > { %1909 = vmatprep.subr.bf16.mxu1 %v1898_v18 }
 0x3ba   : > { %2471 = vmatmul.mubr.msk.bf16.gmra.mrb[80].mxu1 %vm464_vm0, %v3549_v19 }
 0x3bb   : > { %1704 = vmatprep.mubr.bf16.mxu1 %v3847_v49  ;;  %1910 = vmatpush1.bf16.msra.mxu1 %v1897_v54 }
 0x3bc   : > { %1911 = vmatprep.subr.bf16.mxu1 %v1900_v58 }
 0x3bf   : > { %1912 = vmatpush1.bf16.msra.mxu1 %v1899_v22 }
 0x3c0   : > { %2669 = vmatprep.subr.bf16.mxu1 %v2772_v26 }
 0x3c2   : > { %2472 = vmatmul.mubr.msk.bf16.gmra.mrb[84].mxu1 %vm464_vm0, %v3560_v27 }
 0x3c3   : > { %1714 = vmatprep.mubr.bf16.mxu1 %v3847_v49 }
 0x3ca   : > { %2473 = vmatmul.mubr.msk.bf16.gmra.mrb[88].mxu1 %vm464_vm0, %v3568_v29 }
 0x3cb   : > { %1724 = vmatprep.mubr.bf16.mxu1 %v3847_v49 }
 0x3d2   : > { %2474 = vmatmul.mubr.msk.bf16.gmra.mrb[92].mxu1 %vm464_vm0, %v3576_v51 }
 0x3d3   : > { %1933 = vmatprep.mubr.bf16.mxu1 %v3847_v49 }
 0x3da   : > { %2499 = vmatmul.mubr.msk.bf16.vlgmr.msra.gmra.mrb[96].mxu1 %vm464_vm0, %v3367_v16  ;;  %v2779_v16 = vld [vmem:[%s3837_s5 + $0x50] sm:$0xff]  }
 0x3db   : > { %1943 = vmatprep.mubr.bf16.mxu1 %v3847_v49  ;;  %2670 = vmatpush3.bf16.msra.mxu1 %v2776_v56 }
 0x3dc   : > { %2671 = vmatprep.subr.bf16.mxu1 %v2777_v61 }
 0x3df   : > { %2672 = vmatpush3.bf16.msra.mxu1 %v2778_v1 }
 0x3e0   : > { %2673 = vmatprep.subr.bf16.mxu1 %v2779_v16 }
 0x3e2   : > { %2500 = vmatmul.mubr.msk.bf16.gmra.mrb[100].mxu1 %vm464_vm0, %v3379_v34  ;;  %v2783_v34 = vld [vmem:[%s3837_s5 + $0x60] sm:$0xff]  }
 0x3e3   : > { %1953 = vmatprep.mubr.bf16.mxu1 %v3847_v49  ;;  %2674 = vmatpush3.bf16.msra.mxu1 %v2780_v46 }
 0x3e4   : > { %2675 = vmatprep.subr.bf16.mxu1 %v2781_v23 }
 0x3e7   : > { %2676 = vmatpush3.bf16.msra.mxu1 %v2782_v62 }
 0x3e8   : > { %2677 = vmatprep.subr.bf16.mxu1 %v2783_v34 }
 0x3ea   : > { %2501 = vmatmul.mubr.msk.bf16.gmra.mrb[104].mxu1 %vm464_vm0, %v3391_v35  ;;  %v2787_v35 = vld [vmem:[%s3837_s5 + $0x70] sm:$0xff]  }
 0x3eb   : > { %1963 = vmatprep.mubr.bf16.mxu1 %v3847_v49  ;;  %2678 = vmatpush3.bf16.msra.mxu1 %v2784_v13 }
 0x3ec   : > { %2679 = vmatprep.subr.bf16.mxu1 %v2785_v28 }
 0x3ef   : > { %2680 = vmatpush3.bf16.msra.mxu1 %v2786_v15 }
 0x3f0   : > { %2681 = vmatprep.subr.bf16.mxu1 %v2787_v35 }
 0x3f2   : > { %2502 = vmatmul.mubr.msk.bf16.gmra.mrb[108].mxu1 %vm464_vm0, %v3403_v36 }
 0x3f3   : > { %1973 = vmatprep.mubr.bf16.mxu1 %v3847_v49  ;;  %2682 = vmatpush3.bf16.msra.mxu1 %v2788_v52 }
 0x3f4   : > { %2683 = vmatprep.subr.bf16.mxu1 %v2789_v11 }
 0x3f7   : > { %2684 = vmatpush3.bf16.msra.mxu1 %v2790_v4 }
 0x3fa   : > { %2503 = vmatmul.mubr.msk.bf16.gmra.mrb[112].mxu1 %vm464_vm0, %v3414_v43 }
 0x3fb   : > { %1983 = vmatprep.mubr.bf16.mxu1 %v3847_v49 }
 0x402   : > { %2504 = vmatmul.mubr.msk.bf16.gmra.mrb[116].mxu1 %vm464_vm0, %v3422_v47 }
 0x422   : > { %v2581_v36 = vpop.f32.mrb[48].mxu1 }
 0x423   : > { %v2582_v20 = vpop.f32.mrb[49].mxu1 }
 0x424   : > { %v2583_v3 = vadd.f32 %v2582_v20, %v2581_v36  ;;  %v2584_v57 = vpop.f32.mrb[50].mxu1 }
 0x425   : > { %v2585_v39 = vpop.f32.mrb[51].mxu1 }
 0x426   : > { %v2586_v18 = vadd.f32 %v2585_v39, %v2584_v57  ;;  %1427 = vrot.lane.b32.xlu0 %v2583_v3, %s2800_s22 }
 0x428   : > { %1429 = vrot.lane.b32.xlu1 %v2586_v18, %s2800_s22 }
 0x42a   : > { %v2587_v32 = vpop.f32.mrb[52].mxu1 }
 0x42b   : > { %v2588_v17 = vpop.f32.mrb[53].mxu1 }
 0x42c   : > { %v2589_v63 = vadd.f32 %v2588_v17, %v2587_v32  ;;  %v2590_v43 = vpop.f32.mrb[54].mxu1 }
 0x42d   : > { %v2591_v50 = vpop.f32.mrb[55].mxu1 }
 0x42e   : > { %v2592_v54 = vadd.f32 %v2591_v50, %v2590_v43  ;;  %1431 = vrot.lane.b32.xlu0 %v2589_v63, %s2800_s22 }
 0x430   : > { %1433 = vrot.lane.b32.xlu1 %v2592_v54, %s2800_s22 }
 0x432   : > { %v2593_v47 = vpop.f32.mrb[56].mxu1 }
 0x433   : > { %v2594_v58 = vpop.f32.mrb[57].mxu1 }
 0x434   : > { %v2595_v7 = vadd.f32 %v2594_v58, %v2593_v47  ;;  %v2596_v12 = vpop.f32.mrb[58].mxu1 }
 0x435   : > { %v2597_v22 = vpop.f32.mrb[59].mxu1 }
 0x436   : > { %v2598_v26 = vadd.f32 %v2597_v22, %v2596_v12  ;;  %1435 = vrot.lane.b32.xlu0 %v2595_v7, %s2800_s22 }
 0x438   : > { %1437 = vrot.lane.b32.xlu1 %v2598_v26, %s2800_s22 }
 0x43a   : > { %v2599_v56 = vpop.f32.mrb[60].mxu1 }
 0x43b   : > { %v2600_v61 = vpop.f32.mrb[61].mxu1 }
 0x43c   : > { %v2601_v1 = vadd.f32 %v2600_v61, %v2599_v56  ;;  %v2602_v16 = vpop.f32.mrb[62].mxu1 }
 0x43d   : > { %v2603_v46 = vpop.f32.mrb[63].mxu1 }
 0x43e   : > { %v2604_v23 = vadd.f32 %v2603_v46, %v2602_v16  ;;  %1439 = vrot.lane.b32.xlu0 %v2601_v1, %s2800_s22 }
 0x440   : > { %1441 = vrot.lane.b32.xlu1 %v2604_v23, %s2800_s22 }
 0x442   : > { %v2605_v62 = vpop.f32.mrb[64].mxu1 }
 0x443   : > { %v2606_v34 = vpop.f32.mrb[65].mxu1 }
 0x444   : > { %v2607_v13 = vadd.f32 %v2606_v34, %v2605_v62  ;;  %v2608_v28 = vpop.f32.mrb[66].mxu1 }
 0x445   : > { %v2609_v15 = vpop.f32.mrb[67].mxu1 }
 0x446   : > { %v2610_v35 = vadd.f32 %v2609_v15, %v2608_v28  ;;  %1443 = vrot.lane.b32.xlu0 %v2607_v13, %s2800_s22 }
 0x448   : > { %1445 = vrot.lane.b32.xlu1 %v2610_v35, %s2800_s22 }
 0x44a   : > { %v2611_v52 = vpop.f32.mrb[68].mxu1 }
 0x44b   : > { %v2612_v11 = vpop.f32.mrb[69].mxu1 }
 0x44c   : > { %v2613_v4 = vadd.f32 %v2612_v11, %v2611_v52  ;;  %v2614_v36 = vpop.f32.mrb[70].mxu1 }
 0x44d   : > { %v2615_v20 = vpop.f32.mrb[71].mxu1 }
 0x44e   : > { %v2616_v3 = vadd.f32 %v2615_v20, %v2614_v36  ;;  %1447 = vrot.lane.b32.xlu0 %v2613_v4, %s2800_s22 }
 0x450   : > { %1449 = vrot.lane.b32.xlu1 %v2616_v3, %s2800_s22 }
 0x47d   : > { %v1676_v57 = vpop.f32.mrb[72].mxu1 }
 0x47e   : > { %v1677_v39 = vadd.f32 %v1676_v57, %v3248_v31  ;;  %v1678_v18 = vpop.f32.mrb[73].mxu1 }
 0x47f   : > { %v1679_v32 = vadd.f32 %v1678_v18, %v3248_v31  ;;  %v1680_v17 = vpop.f32.mrb[74].mxu1 }
 0x480   : > { %v1681_v63 = vadd.f32 %v1680_v17, %v3251_v37  ;;  %v1682_v43 = vpop.f32.mrb[75].mxu1  ;;  %v1735_v54 = vmax.f32 %v1677_v39, 0.0 }
 0x481   : > { %v1683_v50 = vadd.f32 %v1682_v43, %v3251_v37  ;;  %v1736_v58 = vmax.f32 %v1679_v32, 0.0 }
 0x482   : > { %v1737_v47 = vmax.f32 %v1681_v63, 0.0 }
 0x483   : > { %v1738_v7 = vmax.f32 %v1683_v50, 0.0 }
 0x484   : > { %v1759_v12 = vpack.c.bf16 %v1737_v47, %v1735_v54 }
 0x485   : > { %v1760_v22 = vpack.c.bf16 %v1738_v7, %v1736_v58  ;;  %v1686_v26 = vpop.f32.mrb[76].mxu1 }
 0x486   : > { %v1687_v56 = vadd.f32 %v1686_v26, %v3256_v59  ;;  %v1688_v61 = vpop.f32.mrb[77].mxu1 }
 0x487   : > { %v1689_v1 = vadd.f32 %v1688_v61, %v3256_v59  ;;  %v1690_v16 = vpop.f32.mrb[78].mxu1  ;;  %1803 = vmatprep.mubr.bf16.mxu0 %v1760_v22 }
 0x488   : > { %v1691_v46 = vadd.f32 %v1690_v16, %v3259_v10  ;;  %v1692_v23 = vpop.f32.mrb[79].mxu1  ;;  %1804 = vmatmul.mubr.bf16.vlgmr.msra.gmra.mrb[96].mxu0 %v1759_v12  ;;  %v1739_v34 = vmax.f32 %v1687_v56, 0.0 }
 0x489   : > { %v1693_v62 = vadd.f32 %v1692_v23, %v3259_v10  ;;  %v1740_v28 = vmax.f32 %v1689_v1, 0.0 }
 0x48a   : > { %v1741_v13 = vmax.f32 %v1691_v46, 0.0 }
 0x48b   : > { %v1742_v15 = vmax.f32 %v1693_v62, 0.0 }
 0x48c   : > { %v1761_v35 = vpack.c.bf16 %v1741_v13, %v1739_v34 }
 0x48d   : > { %v1762_v52 = vpack.c.bf16 %v1742_v15, %v1740_v28  ;;  %v1696_v11 = vpop.f32.mrb[80].mxu1 }
 0x48e   : > { %v1697_v4 = vadd.f32 %v1696_v11, %v3264_v33  ;;  %v1698_v36 = vpop.f32.mrb[81].mxu1 }
 0x48f   : > { %v1699_v20 = vadd.f32 %v1698_v36, %v3264_v33  ;;  %v1700_v3 = vpop.f32.mrb[82].mxu1  ;;  %1811 = vmatprep.mubr.bf16.mxu0 %v1762_v52 }
 0x490   : > { %v1701_v57 = vadd.f32 %v1700_v3, %v3267_v45  ;;  %v1702_v39 = vpop.f32.mrb[83].mxu1  ;;  %1812 = vmatmul.mubr.bf16.gmra.mrb[100].mxu0 %v1761_v35  ;;  %v1743_v32 = vmax.f32 %v1697_v4, 0.0 }
 0x491   : > { %v1703_v18 = vadd.f32 %v1702_v39, %v3267_v45  ;;  %v1744_v63 = vmax.f32 %v1699_v20, 0.0 }
 0x492   : > { %v1745_v17 = vmax.f32 %v1701_v57, 0.0 }
 0x493   : > { %v1746_v43 = vmax.f32 %v1703_v18, 0.0 }
 0x494   : > { %v1763_v50 = vpack.c.bf16 %v1745_v17, %v1743_v32 }
 0x495   : > { %v1764_v54 = vpack.c.bf16 %v1746_v43, %v1744_v63  ;;  %v1706_v47 = vpop.f32.mrb[84].mxu1 }
 0x496   : > { %v1707_v58 = vadd.f32 %v1706_v47, %v3272_v14  ;;  %v1708_v7 = vpop.f32.mrb[85].mxu1 }
 0x497   : > { %v1709_v12 = vadd.f32 %v1708_v7, %v3272_v14  ;;  %v1710_v22 = vpop.f32.mrb[86].mxu1  ;;  %1819 = vmatprep.mubr.bf16.mxu0 %v1764_v54 }
 0x498   : > { %v1711_v26 = vadd.f32 %v1710_v22, %v3275_v21  ;;  %v1712_v56 = vpop.f32.mrb[87].mxu1  ;;  %1820 = vmatmul.mubr.bf16.gmra.mrb[104].mxu0 %v1763_v50  ;;  %v1428_v61 = vpop.permute.xlu0 %1427  ;;  %v1747_v16 = vmax.f32 %v1707_v58, 0.0 }
 0x499   : > { %v1713_v1 = vadd.f32 %v1712_v56, %v3275_v21  ;;  %1464 = vst.msk [vmem:[%s3431_s18] sm:$0xff] %vm1463_vm2, %v1428_v61  ;;  %v1748_v62 = vmax.f32 %v1709_v12, 0.0 }
 0x49a   : > { %v1749_v46 = vmax.f32 %v1711_v26, 0.0  ;;  %v1430_v23 = vpop.permute.xlu1 %1429 }
 0x49b   : > { %v1750_v34 = vmax.f32 %v1713_v1, 0.0  ;;  %1465 = vst.msk [vmem:[%s3431_s18 + $0x10] sm:$0xff] %vm1463_vm2, %v1430_v23 }
 0x49c   : > { %v1765_v13 = vpack.c.bf16 %v1749_v46, %v1747_v16 }
 0x49d   : > { %v1766_v28 = vpack.c.bf16 %v1750_v34, %v1748_v62  ;;  %v1716_v15 = vpop.f32.mrb[88].mxu1 }
 0x49e   : > { %v1717_v35 = vadd.f32 %v1716_v15, %v3280_v53  ;;  %v1718_v52 = vpop.f32.mrb[89].mxu1 }
 0x49f   : > { %v1719_v11 = vadd.f32 %v1718_v52, %v3280_v53  ;;  %v1720_v4 = vpop.f32.mrb[90].mxu1  ;;  %1827 = vmatprep.mubr.bf16.mxu0 %v1766_v28 }
 0x4a0   : > { %v1721_v36 = vadd.f32 %v1720_v4, %v3283_v6  ;;  %v1722_v20 = vpop.f32.mrb[91].mxu1  ;;  %1828 = vmatmul.mubr.bf16.gmra.mrb[108].mxu0 %v1765_v13  ;;  %v1432_v3 = vpop.permute.xlu0 %1431  ;;  %v1751_v39 = vmax.f32 %v1717_v35, 0.0 }
 0x4a1   : > { %v1723_v57 = vadd.f32 %v1722_v20, %v3283_v6  ;;  %1466 = vst.msk [vmem:[%s3431_s18 + $0x20] sm:$0xff] %vm1463_vm2, %v1432_v3  ;;  %v1752_v17 = vmax.f32 %v1719_v11, 0.0 }
 0x4a2   : > { %v1753_v18 = vmax.f32 %v1721_v36, 0.0  ;;  %v1434_v32 = vpop.permute.xlu1 %1433 }
 0x4a3   : > { %v1754_v63 = vmax.f32 %v1723_v57, 0.0  ;;  %1467 = vst.msk [vmem:[%s3431_s18 + $0x30] sm:$0xff] %vm1463_vm2, %v1434_v32 }
 0x4a4   : > { %v1767_v43 = vpack.c.bf16 %v1753_v18, %v1751_v39 }
 0x4a5   : > { %v1768_v50 = vpack.c.bf16 %v1754_v63, %v1752_v17  ;;  %v1726_v54 = vpop.f32.mrb[92].mxu1 }
 0x4a6   : > { %v1727_v47 = vadd.f32 %v1726_v54, %v3288_v41  ;;  %v1728_v58 = vpop.f32.mrb[93].mxu1 }
 0x4a7   : > { %v1729_v7 = vadd.f32 %v1728_v58, %v3288_v41  ;;  %v1730_v12 = vpop.f32.mrb[94].mxu1  ;;  %1835 = vmatprep.mubr.bf16.mxu0 %v1768_v50 }
 0x4a8   : > { %v1731_v22 = vadd.f32 %v1730_v12, %v3291_v5  ;;  %v1732_v26 = vpop.f32.mrb[95].mxu1  ;;  %1836 = vmatmul.mubr.bf16.gmra.mrb[112].mxu0 %v1767_v43  ;;  %v1436_v56 = vpop.permute.xlu0 %1435  ;;  %v1755_v1 = vmax.f32 %v1727_v47, 0.0 }
 0x4a9   : > { %v1733_v61 = vadd.f32 %v1732_v26, %v3291_v5  ;;  %1468 = vst.msk [vmem:[%s3431_s18 + $0x40] sm:$0xff] %vm1463_vm2, %v1436_v56  ;;  %v1756_v23 = vmax.f32 %v1729_v7, 0.0 }
 0x4aa   : > { %v1757_v16 = vmax.f32 %v1731_v22, 0.0  ;;  %v1438_v46 = vpop.permute.xlu1 %1437 }
 0x4ab   : > { %v1758_v62 = vmax.f32 %v1733_v61, 0.0  ;;  %1469 = vst.msk [vmem:[%s3431_s18 + $0x50] sm:$0xff] %vm1463_vm2, %v1438_v46 }
 0x4ac   : > { %v1769_v34 = vpack.c.bf16 %v1757_v16, %v1755_v1 }
 0x4ad   : > { %v1770_v13 = vpack.c.bf16 %v1758_v62, %v1756_v23  ;;  %v1935_v28 = vpop.f32.mrb[96].mxu1 }
 0x4ae   : > { %v1936_v15 = vadd.f32 %v1935_v28, %v3848_v40  ;;  %v1937_v35 = vpop.f32.mrb[97].mxu1 }
 0x4af   : > { %v1938_v52 = vadd.f32 %v1937_v35, %v3848_v40  ;;  %1843 = vmatprep.mubr.bf16.mxu0 %v1770_v13  ;;  %v1939_v11 = vpop.f32.mrb[98].mxu1 }
 0x4b0   : > { %v1940_v4 = vadd.f32 %v1939_v11, %v3002_v8  ;;  %1844 = vmatmul.mubr.bf16.gmra.mrb[116].mxu0 %v1769_v34  ;;  %v1941_v36 = vpop.f32.mrb[99].mxu1  ;;  %v1440_v20 = vpop.permute.xlu0 %1439  ;;  %v1994_v57 = vmax.f32 %v1936_v15, 0.0 }
 0x4b1   : > { %v1942_v3 = vadd.f32 %v1941_v36, %v3002_v8  ;;  %1470 = vst.msk [vmem:[%s3431_s18 + $0x60] sm:$0xff] %vm1463_vm2, %v1440_v20  ;;  %2062 = vmatprep.mubr.bf16.mxu0 %v3847_v49  ;;  %v1995_v32 = vmax.f32 %v1938_v52, 0.0 }
 0x4b2   : > { %v1996_v39 = vmax.f32 %v1940_v4, 0.0  ;;  %v1442_v18 = vpop.permute.xlu1 %1441 }
 0x4b3   : > { %v1997_v17 = vmax.f32 %v1942_v3, 0.0  ;;  %1471 = vst.msk [vmem:[%s3431_s18 + $0x70] sm:$0xff] %vm1463_vm2, %v1442_v18 }
 0x4b4   : > { %v2018_v40 = vpack.c.bf16 %v1996_v39, %v1994_v57 }
 0x4b5   : > { %v2019_v63 = vpack.c.bf16 %v1997_v17, %v1995_v32  ;;  %v1945_v43 = vpop.f32.mrb[100].mxu1 }
 0x4b6   : > { %v1946_v50 = vadd.f32 %v1945_v43, %v3849_v42  ;;  %v1947_v54 = vpop.f32.mrb[101].mxu1 }
 0x4b7   : > { %v1948_v8 = vadd.f32 %v1947_v54, %v3849_v42  ;;  %v1949_v47 = vpop.f32.mrb[102].mxu1  ;;  %2030 = vmatprep.subr.bf16.mxu0 %v2019_v63 }
 0x4b8   : > { %v1950_v58 = vadd.f32 %v1949_v47, %v3010_v24  ;;  %v1951_v7 = vpop.f32.mrb[103].mxu1  ;;  %2031 = vmatpush1.bf16.msra.mxu0 %v2018_v40  ;;  %v1444_v12 = vpop.permute.xlu0 %1443  ;;  %v1998_v26 = vmax.f32 %v1946_v50, 0.0 }
 0x4b9   : > { %v1952_v22 = vadd.f32 %v1951_v7, %v3010_v24  ;;  %1472 = vst.msk [vmem:[%s3431_s18 + $0x80] sm:$0xff] %vm1463_vm2, %v1444_v12  ;;  %v1999_v1 = vmax.f32 %v1948_v8, 0.0 }
 0x4ba   : > { %v2000_v56 = vmax.f32 %v1950_v58, 0.0  ;;  %v1446_v61 = vpop.permute.xlu1 %1445 }
 0x4bb   : > { %v2001_v16 = vmax.f32 %v1952_v22, 0.0  ;;  %1473 = vst.msk [vmem:[%s3431_s18 + $0x90] sm:$0xff] %vm1463_vm2, %v1446_v61 }
 0x4bc   : > { %v2020_v42 = vpack.c.bf16 %v2000_v56, %v1998_v26 }
 0x4bd   : > { %v2021_v46 = vpack.c.bf16 %v2001_v16, %v1999_v1  ;;  %v1955_v23 = vpop.f32.mrb[104].mxu1 }
 0x4be   : > { %v1956_v62 = vadd.f32 %v1955_v23, %v3030_v38  ;;  %v1957_v34 = vpop.f32.mrb[105].mxu1 }
 0x4bf   : > { %v1958_v13 = vadd.f32 %v1957_v34, %v3030_v38  ;;  %v1959_v24 = vpop.f32.mrb[106].mxu1  ;;  %2032 = vmatprep.subr.bf16.mxu0 %v2021_v46 }
 0x4c0   : > { %v1960_v28 = vadd.f32 %v1959_v24, %v3040_v44  ;;  %v1961_v15 = vpop.f32.mrb[107].mxu1  ;;  %2033 = vmatpush1.bf16.msra.mxu0 %v2020_v42  ;;  %v1448_v35 = vpop.permute.xlu0 %1447  ;;  %v2002_v11 = vmax.f32 %v1956_v62, 0.0 }
 0x4c1   : > { %v1962_v52 = vadd.f32 %v1961_v15, %v3040_v44  ;;  %1474 = vst.msk [vmem:[%s3431_s18 + $0xa0] sm:$0xff] %vm1463_vm2, %v1448_v35  ;;  %v2003_v20 = vmax.f32 %v1958_v13, 0.0 }
 0x4c2   : > { %v2004_v4 = vmax.f32 %v1960_v28, 0.0  ;;  %v1450_v36 = vpop.permute.xlu1 %1449 }
 0x4c3   : > { %v2005_v3 = vmax.f32 %v1962_v52, 0.0  ;;  %1475 = vst.msk [vmem:[%s3431_s18 + $0xb0] sm:$0xff] %vm1463_vm2, %v1450_v36 }
 0x4c4   : > { %v2022_v57 = vpack.c.bf16 %v2004_v4, %v2002_v11 }
 0x4c5   : > { %v2023_v38 = vpack.c.bf16 %v2005_v3, %v2003_v20  ;;  %v1965_v39 = vpop.f32.mrb[108].mxu1 }
 0x4c6   : > { %v1966_v18 = vadd.f32 %v1965_v39, %v3063_v60  ;;  %v1967_v32 = vpop.f32.mrb[109].mxu1 }
 0x4c7   : > { %v1968_v17 = vadd.f32 %v1967_v32, %v3063_v60  ;;  %v1969_v40 = vpop.f32.mrb[110].mxu1  ;;  %2034 = vmatprep.subr.bf16.mxu0 %v2023_v38 }
 0x4c8   : > { %v1970_v44 = vadd.f32 %v1969_v40, %v3072_v9  ;;  %v1971_v63 = vpop.f32.mrb[111].mxu1  ;;  %2035 = vmatpush1.bf16.msra.mxu0 %v2022_v57  ;;  %v2006_v50 = vmax.f32 %v1966_v18, 0.0 }
 0x4c9   : > { %v1972_v43 = vadd.f32 %v1971_v63, %v3072_v9  ;;  %v2007_v8 = vmax.f32 %v1968_v17, 0.0 }
 0x4ca   : > { %v2008_v54 = vmax.f32 %v1970_v44, 0.0 }
 0x4cb   : > { %v2009_v47 = vmax.f32 %v1972_v43, 0.0 }
 0x4cc   : > { %v2024_v58 = vpack.c.bf16 %v2008_v54, %v2006_v50 }
 0x4cd   : > { %v2025_v7 = vpack.c.bf16 %v2009_v47, %v2007_v8  ;;  %v1975_v12 = vpop.f32.mrb[112].mxu1 }
 0x4ce   : > { %v1976_v22 = vadd.f32 %v1975_v12, %v3095_v25  ;;  %v1977_v26 = vpop.f32.mrb[113].mxu1 }
 0x4cf   : > { %v1978_v60 = vadd.f32 %v1977_v26, %v3095_v25  ;;  %v1979_v56 = vpop.f32.mrb[114].mxu1  ;;  %2036 = vmatprep.subr.bf16.mxu0 %v2025_v7 }
 0x4d0   : > { %v1980_v61 = vadd.f32 %v1979_v56, %v3099_v30  ;;  %v1981_v1 = vpop.f32.mrb[115].mxu1  ;;  %2037 = vmatpush1.bf16.msra.mxu0 %v2024_v58  ;;  %v2010_v16 = vmax.f32 %v1976_v22, 0.0 }
 0x4d1   : > { %v1982_v9 = vadd.f32 %v1981_v1, %v3099_v30  ;;  %v2011_v46 = vmax.f32 %v1978_v60, 0.0 }
 0x4d2   : > { %v2012_v42 = vmax.f32 %v1980_v61, 0.0 }
 0x4d3   : > { %v2013_v23 = vmax.f32 %v1982_v9, 0.0 }
 0x4d4   : > { %v2026_v62 = vpack.c.bf16 %v2012_v42, %v2010_v16 }
 0x4d5   : > { %v2027_v34 = vpack.c.bf16 %v2013_v23, %v2011_v46  ;;  %v1985_v13 = vpop.f32.mrb[116].mxu1 }
 0x4d6   : > { %v1986_v24 = vadd.f32 %v1985_v13, %v3105_v48  ;;  %v1987_v28 = vpop.f32.mrb[117].mxu1 }
 0x4d7   : > { %v1988_v25 = vadd.f32 %v1987_v28, %v3105_v48  ;;  %v1989_v15 = vpop.f32.mrb[118].mxu1  ;;  %2038 = vmatprep.subr.bf16.mxu0 %v2027_v34 }
 0x4d8   : > { %v1990_v35 = vadd.f32 %v1989_v15, %v3108_v55  ;;  %v1991_v52 = vpop.f32.mrb[119].mxu1  ;;  %2039 = vmatpush1.bf16.msra.mxu0 %v2026_v62  ;;  %v2014_v11 = vmax.f32 %v1986_v24, 0.0 }
 0x4d9   : > { %v1992_v30 = vadd.f32 %v1991_v52, %v3108_v55  ;;  %v2015_v36 = vmax.f32 %v1988_v25, 0.0 }
 0x4da   : > { %v2016_v4 = vmax.f32 %v1990_v35, 0.0 }
 0x4db   : > { %v2017_v20 = vmax.f32 %v1992_v30, 0.0 }
 0x4dc   : > { %v2028_v3 = vpack.c.bf16 %v2016_v4, %v2014_v11 }
 0x4dd   : > { %v2029_v57 = vpack.c.bf16 %v2017_v20, %v2015_v36 }
 0x4df   : > { %2040 = vmatprep.subr.bf16.mxu0 %v2029_v57 }
 0x4e0   : > { %2041 = vmatpush1.bf16.msra.mxu0 %v2028_v3 }
 0x4e3   : > { %2505 = vmatmul.mubr.msk.bf16.vlgmr.msra.gmra.mrb[120].mxu0 %vm464_vm0, %v3519_v2 }
 0x4e4   : > { %2072 = vmatprep.mubr.bf16.mxu0 %v3847_v49 }
 0x4eb   : > { %2506 = vmatmul.mubr.msk.bf16.gmra.mrb[124].mxu0 %vm464_vm0, %v3535_v0 }
 0x4ec   : > { %2082 = vmatprep.mubr.bf16.mxu0 %v3847_v49 }
 0x4f3   : > { %2507 = vmatmul.mubr.msk.bf16.gmra.mrb[128].mxu0 %vm464_vm0, %v3549_v19 }
 0x4f4   : > { %2092 = vmatprep.mubr.bf16.mxu0 %v3847_v49 }
 0x4fb   : > { %2508 = vmatmul.mubr.msk.bf16.gmra.mrb[132].mxu0 %vm464_vm0, %v3560_v27 }
 0x4fc   : > { %2102 = vmatprep.mubr.bf16.mxu0 %v3847_v49 }
 0x503   : > { %2509 = vmatmul.mubr.msk.bf16.gmra.mrb[136].mxu0 %vm464_vm0, %v3568_v29 }
 0x504   : > { %2112 = vmatprep.mubr.bf16.mxu0 %v3847_v49 }
 0x50b   : > { %2510 = vmatmul.mubr.msk.bf16.gmra.mrb[140].mxu0 %vm464_vm0, %v3576_v51 }
 0x55b   : > { %v2633_v48 = vpop.f32.mrb[96].mxu0 }
 0x55c   : > { %v2634_v55 = vpop.f32.mrb[97].mxu0 }
 0x55d   : > { %v2635_v2 = vadd.f32 %v2634_v55, %v2633_v48  ;;  %v2636_v0 = vpop.f32.mrb[98].mxu0 }
 0x55e   : > { %v2637_v19 = vpop.f32.mrb[99].mxu0 }
 0x55f   : > { %1852 = vst.msk [vmem:[%s3431_s18 + $0x8] sm:$0xff] %vm1026_vm1, %v2635_v2  ;;  %v2638_v27 = vadd.f32 %v2637_v19, %v2636_v0 }
 0x561   : > { %1853 = vst.msk [vmem:[%s3431_s18 + $0x18] sm:$0xff] %vm1026_vm1, %v2638_v27 }
 0x563   : > { %v2639_v29 = vpop.f32.mrb[100].mxu0 }
 0x564   : > { %v2640_v38 = vpop.f32.mrb[101].mxu0 }
 0x565   : > { %v2641_v39 = vadd.f32 %v2640_v38, %v2639_v29  ;;  %v2642_v49 = vpop.f32.mrb[102].mxu0 }
 0x566   : > { %v2643_v18 = vpop.f32.mrb[103].mxu0 }
 0x567   : > { %1854 = vst.msk [vmem:[%s3431_s18 + $0x28] sm:$0xff] %vm1026_vm1, %v2641_v39  ;;  %v2644_v51 = vadd.f32 %v2643_v18, %v2642_v49 }
 0x569   : > { %1855 = vst.msk [vmem:[%s3431_s18 + $0x38] sm:$0xff] %vm1026_vm1, %v2644_v51 }
 0x56b   : > { %v2645_v32 = vpop.f32.mrb[104].mxu0 }
 0x56c   : > { %v2646_v17 = vpop.f32.mrb[105].mxu0 }
 0x56d   : > { %v2647_v40 = vadd.f32 %v2646_v17, %v2645_v32  ;;  %v2648_v44 = vpop.f32.mrb[106].mxu0 }
 0x56e   : > { %v2649_v63 = vpop.f32.mrb[107].mxu0 }
 0x56f   : > { %1856 = vst.msk [vmem:[%s3431_s18 + $0x48] sm:$0xff] %vm1026_vm1, %v2647_v40  ;;  %v2650_v43 = vadd.f32 %v2649_v63, %v2648_v44 }
 0x571   : > { %1857 = vst.msk [vmem:[%s3431_s18 + $0x58] sm:$0xff] %vm1026_vm1, %v2650_v43 }
 0x573   : > { %v2651_v50 = vpop.f32.mrb[108].mxu0 }
 0x574   : > { %v2652_v54 = vpop.f32.mrb[109].mxu0 }
 0x575   : > { %v2653_v8 = vadd.f32 %v2652_v54, %v2651_v50  ;;  %v2654_v47 = vpop.f32.mrb[110].mxu0 }
 0x576   : > { %v2655_v58 = vpop.f32.mrb[111].mxu0 }
 0x577   : > { %1858 = vst.msk [vmem:[%s3431_s18 + $0x68] sm:$0xff] %vm1026_vm1, %v2653_v8  ;;  %v2656_v7 = vadd.f32 %v2655_v58, %v2654_v47 }
 0x579   : > { %1859 = vst.msk [vmem:[%s3431_s18 + $0x78] sm:$0xff] %vm1026_vm1, %v2656_v7 }
 0x57b   : > { %v2657_v12 = vpop.f32.mrb[112].mxu0 }
 0x57c   : > { %v2658_v22 = vpop.f32.mrb[113].mxu0 }
 0x57d   : > { %v2659_v26 = vadd.f32 %v2658_v22, %v2657_v12  ;;  %v2660_v60 = vpop.f32.mrb[114].mxu0 }
 0x57e   : > { %v2661_v56 = vpop.f32.mrb[115].mxu0 }
 0x57f   : > { %1860 = vst.msk [vmem:[%s3431_s18 + $0x88] sm:$0xff] %vm1026_vm1, %v2659_v26  ;;  %v2662_v61 = vadd.f32 %v2661_v56, %v2660_v60 }
 0x581   : > { %1861 = vst.msk [vmem:[%s3431_s18 + $0x98] sm:$0xff] %vm1026_vm1, %v2662_v61 }
 0x583   : > { %v2663_v1 = vpop.f32.mrb[116].mxu0 }
 0x584   : > { %v2664_v9 = vpop.f32.mrb[117].mxu0 }
 0x585   : > { %v2665_v16 = vadd.f32 %v2664_v9, %v2663_v1  ;;  %v2666_v42 = vpop.f32.mrb[118].mxu0 }
 0x586   : > { %v2667_v46 = vpop.f32.mrb[119].mxu0 }
 0x587   : > { %1862 = vst.msk [vmem:[%s3431_s18 + $0xa8] sm:$0xff] %vm1026_vm1, %v2665_v16  ;;  %v2668_v23 = vadd.f32 %v2667_v46, %v2666_v42 }
 0x589   : > { %1863 = vst.msk [vmem:[%s3431_s18 + $0xb8] sm:$0xff] %vm1026_vm1, %v2668_v23 }
 0x5b6   : > { %v2064_v62 = vpop.f32.mrb[120].mxu0 }
 0x5b7   : > { %v2065_v34 = vadd.f32 %v2064_v62, %v3248_v31  ;;  %v2066_v13 = vpop.f32.mrb[121].mxu0 }
 0x5b8   : > { %v2067_v24 = vadd.f32 %v2066_v13, %v3248_v31  ;;  %v2068_v28 = vpop.f32.mrb[122].mxu0 }
 0x5b9   : > { %v2069_v25 = vadd.f32 %v2068_v28, %v3251_v37  ;;  %v2070_v15 = vpop.f32.mrb[123].mxu0  ;;  %v2123_v52 = vmax.f32 %v2065_v34, 0.0 }
 0x5ba   : > { %v2071_v35 = vadd.f32 %v2070_v15, %v3251_v37  ;;  %v2124_v11 = vmax.f32 %v2067_v24, 0.0 }
 0x5bb   : > { %v2125_v30 = vmax.f32 %v2069_v25, 0.0 }
 0x5bc   : > { %v2126_v4 = vmax.f32 %v2071_v35, 0.0 }
 0x5bd   : > { %v2147_v36 = vpack.c.bf16 %v2125_v30, %v2123_v52 }
 0x5be   : > { %v2148_v20 = vpack.c.bf16 %v2126_v4, %v2124_v11  ;;  %v2074_v3 = vpop.f32.mrb[124].mxu0 }
 0x5bf   : > { %v2075_v57 = vadd.f32 %v2074_v3, %v3256_v59  ;;  %v2076_v48 = vpop.f32.mrb[125].mxu0 }
 0x5c0   : > { %v2077_v55 = vadd.f32 %v2076_v48, %v3256_v59  ;;  %v2078_v2 = vpop.f32.mrb[126].mxu0  ;;  %2191 = vmatprep.mubr.bf16.mxu1 %v2148_v20 }
 0x5c1   : > { %v2079_v31 = vadd.f32 %v2078_v2, %v3259_v10  ;;  %v2080_v0 = vpop.f32.mrb[127].mxu0  ;;  %2192 = vmatmul.mubr.bf16.vlgmr.msra.gmra.mrb[120].mxu1 %v2147_v36  ;;  %v2127_v19 = vmax.f32 %v2075_v57, 0.0 }
 0x5c2   : > { %v2081_v37 = vadd.f32 %v2080_v0, %v3259_v10  ;;  %v2128_v29 = vmax.f32 %v2077_v55, 0.0 }
 0x5c3   : > { %v2129_v27 = vmax.f32 %v2079_v31, 0.0 }
 0x5c4   : > { %v2130_v38 = vmax.f32 %v2081_v37, 0.0 }
 0x5c5   : > { %v2149_v39 = vpack.c.bf16 %v2129_v27, %v2127_v19 }
 0x5c6   : > { %v2150_v49 = vpack.c.bf16 %v2130_v38, %v2128_v29  ;;  %v2084_v18 = vpop.f32.mrb[128].mxu0 }
 0x5c7   : > { %v2085_v51 = vadd.f32 %v2084_v18, %v3264_v33  ;;  %v2086_v32 = vpop.f32.mrb[129].mxu0 }
 0x5c8   : > { %v2087_v59 = vadd.f32 %v2086_v32, %v3264_v33  ;;  %v2088_v17 = vpop.f32.mrb[130].mxu0  ;;  %2199 = vmatprep.mubr.bf16.mxu1 %v2150_v49 }
 0x5c9   : > { %v2089_v40 = vadd.f32 %v2088_v17, %v3267_v45  ;;  %v2090_v44 = vpop.f32.mrb[131].mxu0  ;;  %2200 = vmatmul.mubr.bf16.gmra.mrb[124].mxu1 %v2149_v39  ;;  %v2131_v63 = vmax.f32 %v2085_v51, 0.0 }
 0x5ca   : > { %v2091_v10 = vadd.f32 %v2090_v44, %v3267_v45  ;;  %v2132_v50 = vmax.f32 %v2087_v59, 0.0 }
 0x5cb   : > { %v2133_v43 = vmax.f32 %v2089_v40, 0.0 }
 0x5cc   : > { %v2134_v54 = vmax.f32 %v2091_v10, 0.0 }
 0x5cd   : > { %v2151_v8 = vpack.c.bf16 %v2133_v43, %v2131_v63 }
 0x5ce   : > { %v2152_v47 = vpack.c.bf16 %v2134_v54, %v2132_v50  ;;  %v2094_v58 = vpop.f32.mrb[132].mxu0 }
 0x5cf   : > { %v2095_v7 = vadd.f32 %v2094_v58, %v3272_v14  ;;  %v2096_v12 = vpop.f32.mrb[133].mxu0 }
 0x5d0   : > { %v2097_v33 = vadd.f32 %v2096_v12, %v3272_v14  ;;  %v2098_v22 = vpop.f32.mrb[134].mxu0  ;;  %2207 = vmatprep.mubr.bf16.mxu1 %v2152_v47 }
 0x5d1   : > { %v2099_v26 = vadd.f32 %v2098_v22, %v3275_v21  ;;  %v2100_v60 = vpop.f32.mrb[135].mxu0  ;;  %2208 = vmatmul.mubr.bf16.gmra.mrb[128].mxu1 %v2151_v8  ;;  %v2135_v56 = vmax.f32 %v2095_v7, 0.0 }
 0x5d2   : > { %v2101_v45 = vadd.f32 %v2100_v60, %v3275_v21  ;;  %v2136_v1 = vmax.f32 %v2097_v33, 0.0 }
 0x5d3   : > { %v2137_v61 = vmax.f32 %v2099_v26, 0.0 }
 0x5d4   : > { %v2138_v9 = vmax.f32 %v2101_v45, 0.0 }
 0x5d5   : > { %v2153_v16 = vpack.c.bf16 %v2137_v61, %v2135_v56 }
 0x5d6   : > { %v2154_v42 = vpack.c.bf16 %v2138_v9, %v2136_v1  ;;  %v2104_v46 = vpop.f32.mrb[136].mxu0 }
 0x5d7   : > { %v2105_v23 = vadd.f32 %v2104_v46, %v3280_v53  ;;  %v2106_v62 = vpop.f32.mrb[137].mxu0 }
 0x5d8   : > { %v2107_v14 = vadd.f32 %v2106_v62, %v3280_v53  ;;  %v2108_v34 = vpop.f32.mrb[138].mxu0  ;;  %2215 = vmatprep.mubr.bf16.mxu1 %v2154_v42 }
 0x5d9   : > { %v2109_v13 = vadd.f32 %v2108_v34, %v3283_v6  ;;  %v2110_v24 = vpop.f32.mrb[139].mxu0  ;;  %2216 = vmatmul.mubr.bf16.gmra.mrb[132].mxu1 %v2153_v16  ;;  %v2139_v28 = vmax.f32 %v2105_v23, 0.0 }
 0x5da   : > { %v2111_v21 = vadd.f32 %v2110_v24, %v3283_v6  ;;  %v2140_v15 = vmax.f32 %v2107_v14, 0.0 }
 0x5db   : > { %v2141_v25 = vmax.f32 %v2109_v13, 0.0 }
 0x5dc   : > { %v2142_v35 = vmax.f32 %v2111_v21, 0.0 }
 0x5dd   : > { %v2155_v52 = vpack.c.bf16 %v2141_v25, %v2139_v28 }
 0x5de   : > { %v2156_v30 = vpack.c.bf16 %v2142_v35, %v2140_v15  ;;  %v2114_v11 = vpop.f32.mrb[140].mxu0 }
 0x5df   : > { %v2115_v4 = vadd.f32 %v2114_v11, %v3288_v41  ;;  %v2116_v36 = vpop.f32.mrb[141].mxu0 }
 0x5e0   : > { %v2117_v53 = vadd.f32 %v2116_v36, %v3288_v41  ;;  %v2118_v20 = vpop.f32.mrb[142].mxu0  ;;  %2223 = vmatprep.mubr.bf16.mxu1 %v2156_v30 }
 0x5e1   : > { %v2119_v3 = vadd.f32 %v2118_v20, %v3291_v5  ;;  %v2120_v57 = vpop.f32.mrb[143].mxu0  ;;  %2224 = vmatmul.mubr.bf16.gmra.mrb[136].mxu1 %v2155_v52  ;;  %v2143_v48 = vmax.f32 %v2115_v4, 0.0 }
 0x5e2   : > { %v2121_v6 = vadd.f32 %v2120_v57, %v3291_v5  ;;  %v2144_v2 = vmax.f32 %v2117_v53, 0.0 }
 0x5e3   : > { %v2145_v55 = vmax.f32 %v2119_v3, 0.0 }
 0x5e4   : > { %v2146_v31 = vmax.f32 %v2121_v6, 0.0 }
 0x5e5   : > { %v2157_v0 = vpack.c.bf16 %v2145_v55, %v2143_v48 }
 0x5e6   : > { %v2158_v37 = vpack.c.bf16 %v2146_v31, %v2144_v2 }
 0x5e8   : > { %2231 = vmatprep.mubr.bf16.mxu1 %v2158_v37 }
 0x5e9   : > { %2232 = vmatmul.mubr.bf16.gmra.mrb[140].mxu1 %v2157_v0 }
 0x694   : > { %v2685_v19 = vpop.f32.mrb[120].mxu1 }
 0x695   : > { %v2686_v27 = vpop.f32.mrb[121].mxu1 }
 0x696   : > { %v2687_v29 = vadd.f32 %v2686_v27, %v2685_v19  ;;  %v2688_v41 = vpop.f32.mrb[122].mxu1 }
 0x697   : > { %v2689_v38 = vpop.f32.mrb[123].mxu1 }
 0x698   : > { %v2690_v39 = vadd.f32 %v2689_v38, %v2688_v41  ;;  %2252 = vrot.lane.b32.xlu0 %v2687_v29, %s2800_s22 }
 0x69a   : > { %2254 = vrot.lane.b32.xlu1 %v2690_v39, %s2800_s22 }
 0x69c   : > { %v2691_v49 = vpop.f32.mrb[124].mxu1 }
 0x69d   : > { %v2692_v5 = vpop.f32.mrb[125].mxu1 }
 0x69e   : > { %v2693_v18 = vadd.f32 %v2692_v5, %v2691_v49  ;;  %v2694_v51 = vpop.f32.mrb[126].mxu1 }
 0x69f   : > { %v2695_v32 = vpop.f32.mrb[127].mxu1 }
 0x6a0   : > { %v2696_v59 = vadd.f32 %v2695_v32, %v2694_v51  ;;  %2256 = vrot.lane.b32.xlu0 %v2693_v18, %s2800_s22 }
 0x6a2   : > { %2258 = vrot.lane.b32.xlu1 %v2696_v59, %s2800_s22 }
 0x6a4   : > { %v2697_v17 = vpop.f32.mrb[128].mxu1 }
 0x6a5   : > { %v2698_v40 = vpop.f32.mrb[129].mxu1 }
 0x6a6   : > { %v2699_v44 = vadd.f32 %v2698_v40, %v2697_v17  ;;  %v2700_v10 = vpop.f32.mrb[130].mxu1 }
 0x6a7   : > { %v2701_v63 = vpop.f32.mrb[131].mxu1 }
 0x6a8   : > { %v2702_v43 = vadd.f32 %v2701_v63, %v2700_v10  ;;  %2260 = vrot.lane.b32.xlu0 %v2699_v44, %s2800_s22 }
 0x6aa   : > { %2262 = vrot.lane.b32.xlu1 %v2702_v43, %s2800_s22 }
 0x6ac   : > { %v2703_v50 = vpop.f32.mrb[132].mxu1 }
 0x6ad   : > { %v2704_v54 = vpop.f32.mrb[133].mxu1 }
 0x6ae   : > { %v2705_v8 = vadd.f32 %v2704_v54, %v2703_v50  ;;  %v2706_v47 = vpop.f32.mrb[134].mxu1 }
 0x6af   : > { %v2707_v58 = vpop.f32.mrb[135].mxu1 }
 0x6b0   : > { %v2708_v7 = vadd.f32 %v2707_v58, %v2706_v47  ;;  %2264 = vrot.lane.b32.xlu0 %v2705_v8, %s2800_s22 }
 0x6b2   : > { %2266 = vrot.lane.b32.xlu1 %v2708_v7, %s2800_s22 }
 0x6b4   : > { %v2709_v12 = vpop.f32.mrb[136].mxu1 }
 0x6b5   : > { %v2710_v33 = vpop.f32.mrb[137].mxu1 }
 0x6b6   : > { %v2711_v22 = vadd.f32 %v2710_v33, %v2709_v12  ;;  %v2712_v26 = vpop.f32.mrb[138].mxu1 }
 0x6b7   : > { %v2713_v60 = vpop.f32.mrb[139].mxu1 }
 0x6b8   : > { %v2714_v45 = vadd.f32 %v2713_v60, %v2712_v26  ;;  %2268 = vrot.lane.b32.xlu0 %v2711_v22, %s2800_s22 }
 0x6ba   : > { %2270 = vrot.lane.b32.xlu1 %v2714_v45, %s2800_s22 }
 0x6bc   : > { %v2715_v56 = vpop.f32.mrb[140].mxu1 }
 0x6bd   : > { %v2716_v61 = vpop.f32.mrb[141].mxu1 }
 0x6be   : > { %v2717_v1 = vadd.f32 %v2716_v61, %v2715_v56  ;;  %v2718_v9 = vpop.f32.mrb[142].mxu1 }
 0x6bf   : > { %v2719_v16 = vpop.f32.mrb[143].mxu1 }
 0x6c0   : > { %v2720_v42 = vadd.f32 %v2719_v16, %v2718_v9  ;;  %2272 = vrot.lane.b32.xlu0 %v2717_v1, %s2800_s22 }
 0x6c2   : > { %2274 = vrot.lane.b32.xlu1 %v2720_v42, %s2800_s22 }
 0x70a   : > { %v2253_v46 = vpop.permute.xlu0 %2252 }
 0x70b   : > { %2288 = vst.msk [vmem:[%s3431_s18 + $0x8] sm:$0xff] %vm1463_vm2, %v2253_v46 }
 0x70c   : > { %v2255_v23 = vpop.permute.xlu1 %2254 }
 0x70d   : > { %2289 = vst.msk [vmem:[%s3431_s18 + $0x18] sm:$0xff] %vm1463_vm2, %v2255_v23 }
 0x712   : > { %v2257_v62 = vpop.permute.xlu0 %2256 }
 0x713   : > { %2290 = vst.msk [vmem:[%s3431_s18 + $0x28] sm:$0xff] %vm1463_vm2, %v2257_v62 }
 0x714   : > { %v2259_v14 = vpop.permute.xlu1 %2258 }
 0x715   : > { %2291 = vst.msk [vmem:[%s3431_s18 + $0x38] sm:$0xff] %vm1463_vm2, %v2259_v14 }
 0x71a   : > { %v2261_v34 = vpop.permute.xlu0 %2260 }
 0x71b   : > { %2292 = vst.msk [vmem:[%s3431_s18 + $0x48] sm:$0xff] %vm1463_vm2, %v2261_v34 }
 0x71c   : > { %v2263_v13 = vpop.permute.xlu1 %2262 }
 0x71d   : > { %2293 = vst.msk [vmem:[%s3431_s18 + $0x58] sm:$0xff] %vm1463_vm2, %v2263_v13 }
 0x722   : > { %v2265_v24 = vpop.permute.xlu0 %2264 }
 0x723   : > { %2294 = vst.msk [vmem:[%s3431_s18 + $0x68] sm:$0xff] %vm1463_vm2, %v2265_v24 }
 0x724   : > { %v2267_v21 = vpop.permute.xlu1 %2266 }
 0x725   : > { %2295 = vst.msk [vmem:[%s3431_s18 + $0x78] sm:$0xff] %vm1463_vm2, %v2267_v21 }
 0x72a   : > { %v2269_v28 = vpop.permute.xlu0 %2268 }
 0x72b   : > { %2296 = vst.msk [vmem:[%s3431_s18 + $0x88] sm:$0xff] %vm1463_vm2, %v2269_v28 }
 0x72c   : > { %v2271_v25 = vpop.permute.xlu1 %2270 }
 0x72d   : > { %2297 = vst.msk [vmem:[%s3431_s18 + $0x98] sm:$0xff] %vm1463_vm2, %v2271_v25 }
 0x732   : > { %v2273_v15 = vpop.permute.xlu0 %2272 }
 0x733   : > { %2298 = vst.msk [vmem:[%s3431_s18 + $0xa8] sm:$0xff] %vm1463_vm2, %v2273_v15 }
 0x734   : > { %v2275_v35 = vpop.permute.xlu1 %2274 }
 0x735   : > { %2299 = vst.msk [vmem:[%s3431_s18 + $0xb8] sm:$0xff] %vm1463_vm2, %v2275_v35 }
 0x736 PF: > { %s16_s21 = sadd.s32 1, %s2797_s21  }
 0x737   : > { %p13_p5 = scmp.ge.s32.totalorder %s16_s21, 4  }
 0x739   :  { %15 = sbr.rel (!%p13_p5) target bundleno = 1 (0x1), region = 77 }

</bundles_post_ra>
